<compile_context>
chip_gen: v6e
topology: v6e:2x2x1
jax: 0.10.0
libtpu: 0.0.40
codegen_flags: <defaults>
</compile_context>

<pallas_src>
import functools

import jax
import jax.numpy as jnp
import numpy as np
from jax.experimental import pallas as pl
from jax.experimental.pallas import tpu as pltpu

LANE = 128     # vreg lane width
SUBLANE = 8    # vreg sublane count


def _round_up(n, m):
    return ((n + m - 1) // m) * m


def _pad2(a, rows, cols):
    return jnp.pad(a, ((0, rows - a.shape[0]), (0, cols - a.shape[1])))


def _fused_rnn_kernel(x_ref, wih0_ref, wihr_ref, whh_ref, b_ref, wfc_ref,
                      bfc_ref, o_ref):
    """Whole forward pass in one gridless kernel (everything VMEM/vreg resident).

    x_ref    : (T, Bp, Dp)        time-major input; batch padded to Bp, feat to Dp(=8)
    wih0_ref : (Dp, Hp)           layer-0 W_ih (pre-transposed)
    wihr_ref : (max(L-1,1),Hp,Hp) W_ih for layers 1..L-1 (pre-transposed; dummy if L==1)
    whh_ref  : (L, Hp, Hp)        W_hh (pre-transposed)
    b_ref    : (L, 1, Hp)         pre-summed b_ih + b_hh
    wfc_ref  : (Hp, Op)           FC weight (pre-transposed)
    bfc_ref  : (1, Op)            FC bias
    o_ref    : (Bp, Op)           final output (padded; sliced in wrapper)
    """
    num_layers = whh_ref.shape[0]
    hp = whh_ref.shape[-1]
    t_steps, bp, dp = x_ref.shape

    # Layer-0 hoisted input projection: one MXU matmul for all timesteps,
    # bias folded in (outside the serial time loop). Kept as a register value.
    x_flat = x_ref[...].reshape(t_steps * bp, dp)
    proj = jnp.dot(x_flat, wih0_ref[...],
                   preferred_element_type=jnp.float32) + b_ref[0]

    h = jnp.zeros((bp, hp), jnp.float32)
    for layer in range(num_layers):            # static unroll over layers
        whh_l = whh_ref[layer]                 # hoisted once: RHS stays resident
        h = jnp.zeros((bp, hp), jnp.float32)   # h0 = zeros per layer (PyTorch)
        hs = []
        for t in range(t_steps):               # static unroll; serial recurrence
            row = t * bp                       # static, sublane-aligned offset
            pre = proj[row:row + bp, :] + jnp.dot(
                h, whh_l, preferred_element_type=jnp.float32)
            h = jnp.tanh(pre)
            if layer + 1 < num_layers:
                hs.append(h)
        if layer + 1 < num_layers:
            # Next layer's hoisted projection from the register-resident sequence.
            seq = jnp.concatenate(hs, axis=0)  # (T*Bp, Hp), sublane-aligned tiles
            proj = jnp.dot(seq, wihr_ref[layer],
                           preferred_element_type=jnp.float32) + b_ref[layer + 1]

    # Final Linear on out[:, -1, :]; single lane-dense store.
    o_ref[...] = (jnp.dot(h, wfc_ref[...], preferred_element_type=jnp.float32)
                  + bfc_ref[...]).astype(o_ref.dtype)


def prepare_params(params, *, input_dim, hidden_dim, layer_dim, output_dim):
    """Pad / stack parameters ONCE (outside the per-call jitted path)."""
    del output_dim  # implied by fc weight shape
    Hp = _round_up(max(hidden_dim, LANE), LANE)
    Dp = _round_up(max(input_dim, SUBLANE), SUBLANE)
    Op = _round_up(max(params["fc"]["w_t"].shape[1], LANE), LANE)

    wih0 = _pad2(params["rnn"][0]["w_ih_t"], Dp, Hp)
    wih_rest, whh, bias = [], [], []
    for l in range(layer_dim):
        p = params["rnn"][l]
        whh.append(_pad2(p["w_hh_t"], Hp, Hp))
        bias.append(_pad2(p["b_ih"] + p["b_hh"], 1, Hp))
        if l > 0:
            wih_rest.append(_pad2(p["w_ih_t"], Hp, Hp))
    if not wih_rest:                           # dummy so the stacked arg exists (L==1)
        wih_rest.append(jnp.zeros((Hp, Hp), jnp.float32))

    return {
        "wih0": wih0,                          # (Dp, Hp)
        "wih_rest": jnp.stack(wih_rest),       # (max(L-1,1), Hp, Hp)
        "whh": jnp.stack(whh),                 # (L, Hp, Hp)
        "bias": jnp.stack(bias),               # (L, 1, Hp)
        "wfc": _pad2(params["fc"]["w_t"], Hp, Op),   # (Hp, Op)
        "bfc": _pad2(params["fc"]["b"], 1, Op),      # (1, Op)
    }


@functools.partial(jax.jit, static_argnames=("output_dim",))
def rnn_model_forward(x_btd, prepared, *, output_dim):
    B, T, D = x_btd.shape
    Dp = prepared["wih0"].shape[0]
    Op = prepared["wfc"].shape[-1]
    Bp = _round_up(max(B, SUBLANE), SUBLANE)

    # Only per-call work: relayout x to time-major with minimal padding
    # (batch -> 8 sublanes, feature -> Dp=8 lanes; no 128-lane inflation).
    x_tbd = jnp.transpose(x_btd, (1, 0, 2))
    x_pad = jnp.pad(x_tbd, ((0, 0), (0, Bp - B), (0, Dp - D)))

    out_pad = pl.pallas_call(
        _fused_rnn_kernel,
        out_shape=jax.ShapeDtypeStruct((Bp, Op), jnp.float32),
        compiler_params=pltpu.CompilerParams(
            # All operands + register-resident working set are tiny (<1 MiB);
            # make the scoped limit explicit so the all-resident strategy is
            # portable to v5e's 16 MiB default and v7x's 64 MiB physical VMEM.
            vmem_limit_bytes=32 * 1024 * 1024),
    )(x_pad, prepared["wih0"], prepared["wih_rest"], prepared["whh"],
      prepared["bias"], prepared["wfc"], prepared["bfc"])
    return out_pad[:B, :output_dim]


def init_params(key, input_dim, hidden_dim, layer_dim, output_dim):
    # PyTorch default init: U(-1/sqrt(H), 1/sqrt(H)) for RNN and Linear (fan_in=H).
    bound = 1.0 / np.sqrt(hidden_dim)
    params = {"rnn": []}
    for l in range(layer_dim):
        d_in = input_dim if l == 0 else hidden_dim
        key, k1, k2, k3, k4 = jax.random.split(key, 5)
        params["rnn"].append({
            "w_ih_t": jax.random.uniform(k1, (d_in, hidden_dim), jnp.float32, -bound, bound),
            "w_hh_t": jax.random.uniform(k2, (hidden_dim, hidden_dim), jnp.float32, -bound, bound),
            "b_ih": jax.random.uniform(k3, (1, hidden_dim), jnp.float32, -bound, bound),
            "b_hh": jax.random.uniform(k4, (1, hidden_dim), jnp.float32, -bound, bound),
        })
    key, k1, k2 = jax.random.split(key, 3)
    params["fc"] = {
        "w_t": jax.random.uniform(k1, (hidden_dim, output_dim), jnp.float32, -bound, bound),
        "b": jax.random.uniform(k2, (1, output_dim), jnp.float32, -bound, bound),
    }
    return params


def reference_forward(x, params, layer_dim, hidden_dim):
    # pure-JAX reference for correctness check
    B = x.shape[0]
    h_seq = x
    for l in range(layer_dim):
        p = params["rnn"][l]

        def step(h, x_t, p=p):
            h_new = jnp.tanh(x_t @ p["w_ih_t"] + h @ p["w_hh_t"] + p["b_ih"] + p["b_hh"])
            return h_new, h_new

        h0 = jnp.zeros((B, hidden_dim), jnp.float32)
        _, ys = jax.lax.scan(step, h0, jnp.transpose(h_seq, (1, 0, 2)))
        h_seq = jnp.transpose(ys, (1, 0, 2))
    last = h_seq[:, -1, :]
    return last @ params["fc"]["w_t"] + params["fc"]["b"]


if __name__ == "__main__":
    input_dim, hidden_dim, layer_dim, output_dim = 4, 32, 2, 3
    B, T = 2, 8
    dropout_prob = 0.1  # inactive in inference forward

    key = jax.random.PRNGKey(0)
    key, xk = jax.random.split(key)
    x = jax.random.normal(xk, (B, T, input_dim), dtype=jnp.float32)
    params = init_params(key, input_dim, hidden_dim, layer_dim, output_dim)

    # One-time parameter preparation (kept out of the jitted per-call path).
    prepared = jax.block_until_ready(
        prepare_params(params, input_dim=input_dim, hidden_dim=hidden_dim,
                       layer_dim=layer_dim, output_dim=output_dim))

    out = rnn_model_forward(x, prepared, output_dim=output_dim)
    out = jax.block_until_ready(out)

    ref = reference_forward(x, params, layer_dim, hidden_dim)
    np.testing.assert_allclose(np.asarray(out), np.asarray(ref), rtol=1e-5, atol=1e-5)

    print("KERNEL_OK")
</pallas_src>

<mosaic_0001>
module attributes {stable_mosaic.version = 11 : i64} {
  func.func @_fused_rnn_kernel(%arg0: memref<8x8x8xf32, #tpu.memory_space<vmem>>, %arg1: memref<8x128xf32, #tpu.memory_space<vmem>>, %arg2: memref<1x128x128xf32, #tpu.memory_space<vmem>>, %arg3: memref<2x128x128xf32, #tpu.memory_space<vmem>>, %arg4: memref<2x1x128xf32, #tpu.memory_space<vmem>>, %arg5: memref<128x128xf32, #tpu.memory_space<vmem>>, %arg6: memref<1x128xf32, #tpu.memory_space<vmem>>, %arg7: memref<8x128xf32, #tpu.memory_space<vmem>>) attributes {dimension_semantics = [], scalar_prefetch = 0 : i64, scratch_operands = 0 : i64, tpu.core_type = #tpu.core_type<tc>} {
    %c0 = arith.constant 0 : index
    %c0_0 = arith.constant 0 : index
    %c0_1 = arith.constant 0 : index
    %0 = vector.load %arg0[%c0, %c0_0, %c0_1] : memref<8x8x8xf32, #tpu.memory_space<vmem>>, vector<8x8x8xf32>
    %1 = vector.shape_cast %0 : vector<8x8x8xf32> to vector<64x8xf32>
    %c0_2 = arith.constant 0 : index
    %c0_3 = arith.constant 0 : index
    %2 = vector.load %arg1[%c0_2, %c0_3] : memref<8x128xf32, #tpu.memory_space<vmem>>, vector<8x128xf32>
    %cst = arith.constant dense<0.000000e+00> : vector<64x128xf32>
    %3 = tpu.matmul %1, %2, %cst {dimension_numbers = #tpu.dot_dimension_numbers<[1], [0], [0], [1], [0, 0, 1, 1], [], []>} : vector<64x8xf32>, vector<8x128xf32>, vector<64x128xf32> -> vector<64x128xf32>
    %c0_4 = arith.constant 0 : index
    %c0_5 = arith.constant 0 : index
    %c0_6 = arith.constant 0 : index
    %4 = vector.load %arg4[%c0_4, %c0_5, %c0_6] : memref<2x1x128xf32, #tpu.memory_space<vmem>>, vector<1x1x128xf32>
    %5 = vector.shape_cast %4 : vector<1x1x128xf32> to vector<1x128xf32>
    %6 = vector.broadcast %5 : vector<1x128xf32> to vector<64x128xf32>
    %7 = arith.addf %3, %6 : vector<64x128xf32>
    %c0_7 = arith.constant 0 : index
    %c0_8 = arith.constant 0 : index
    %c0_9 = arith.constant 0 : index
    %8 = vector.load %arg3[%c0_7, %c0_8, %c0_9] : memref<2x128x128xf32, #tpu.memory_space<vmem>>, vector<1x128x128xf32>
    %9 = vector.shape_cast %8 : vector<1x128x128xf32> to vector<128x128xf32>
    %cst_10 = arith.constant 0.000000e+00 : f32
    %10 = vector.broadcast %cst_10 : f32 to vector<8x128xf32>
    %11 = vector.extract_strided_slice %7 {offsets = [0, 0], sizes = [8, 128], strides = [1, 1]} : vector<64x128xf32> to vector<8x128xf32>
    %cst_11 = arith.constant dense<0.000000e+00> : vector<8x128xf32>
    %12 = tpu.matmul %10, %9, %cst_11 {dimension_numbers = #tpu.dot_dimension_numbers<[1], [0], [0], [1], [0, 0, 1, 1], [], []>} : vector<8x128xf32>, vector<128x128xf32>, vector<8x128xf32> -> vector<8x128xf32>
    %13 = arith.addf %11, %12 : vector<8x128xf32>
    %14 = math.tanh %13 : vector<8x128xf32>
    %15 = vector.extract_strided_slice %7 {offsets = [8, 0], sizes = [8, 128], strides = [1, 1]} : vector<64x128xf32> to vector<8x128xf32>
    %cst_12 = arith.constant dense<0.000000e+00> : vector<8x128xf32>
    %16 = tpu.matmul %14, %9, %cst_12 {dimension_numbers = #tpu.dot_dimension_numbers<[1], [0], [0], [1], [0, 0, 1, 1], [], []>} : vector<8x128xf32>, vector<128x128xf32>, vector<8x128xf32> -> vector<8x128xf32>
    %17 = arith.addf %15, %16 : vector<8x128xf32>
    %18 = math.tanh %17 : vector<8x128xf32>
    %19 = vector.extract_strided_slice %7 {offsets = [16, 0], sizes = [8, 128], strides = [1, 1]} : vector<64x128xf32> to vector<8x128xf32>
    %cst_13 = arith.constant dense<0.000000e+00> : vector<8x128xf32>
    %20 = tpu.matmul %18, %9, %cst_13 {dimension_numbers = #tpu.dot_dimension_numbers<[1], [0], [0], [1], [0, 0, 1, 1], [], []>} : vector<8x128xf32>, vector<128x128xf32>, vector<8x128xf32> -> vector<8x128xf32>
    %21 = arith.addf %19, %20 : vector<8x128xf32>
    %22 = math.tanh %21 : vector<8x128xf32>
    %23 = vector.extract_strided_slice %7 {offsets = [24, 0], sizes = [8, 128], strides = [1, 1]} : vector<64x128xf32> to vector<8x128xf32>
    %cst_14 = arith.constant dense<0.000000e+00> : vector<8x128xf32>
    %24 = tpu.matmul %22, %9, %cst_14 {dimension_numbers = #tpu.dot_dimension_numbers<[1], [0], [0], [1], [0, 0, 1, 1], [], []>} : vector<8x128xf32>, vector<128x128xf32>, vector<8x128xf32> -> vector<8x128xf32>
    %25 = arith.addf %23, %24 : vector<8x128xf32>
    %26 = math.tanh %25 : vector<8x128xf32>
    %27 = vector.extract_strided_slice %7 {offsets = [32, 0], sizes = [8, 128], strides = [1, 1]} : vector<64x128xf32> to vector<8x128xf32>
    %cst_15 = arith.constant dense<0.000000e+00> : vector<8x128xf32>
    %28 = tpu.matmul %26, %9, %cst_15 {dimension_numbers = #tpu.dot_dimension_numbers<[1], [0], [0], [1], [0, 0, 1, 1], [], []>} : vector<8x128xf32>, vector<128x128xf32>, vector<8x128xf32> -> vector<8x128xf32>
    %29 = arith.addf %27, %28 : vector<8x128xf32>
    %30 = math.tanh %29 : vector<8x128xf32>
    %31 = vector.extract_strided_slice %7 {offsets = [40, 0], sizes = [8, 128], strides = [1, 1]} : vector<64x128xf32> to vector<8x128xf32>
    %cst_16 = arith.constant dense<0.000000e+00> : vector<8x128xf32>
    %32 = tpu.matmul %30, %9, %cst_16 {dimension_numbers = #tpu.dot_dimension_numbers<[1], [0], [0], [1], [0, 0, 1, 1], [], []>} : vector<8x128xf32>, vector<128x128xf32>, vector<8x128xf32> -> vector<8x128xf32>
    %33 = arith.addf %31, %32 : vector<8x128xf32>
    %34 = math.tanh %33 : vector<8x128xf32>
    %35 = vector.extract_strided_slice %7 {offsets = [48, 0], sizes = [8, 128], strides = [1, 1]} : vector<64x128xf32> to vector<8x128xf32>
    %cst_17 = arith.constant dense<0.000000e+00> : vector<8x128xf32>
    %36 = tpu.matmul %34, %9, %cst_17 {dimension_numbers = #tpu.dot_dimension_numbers<[1], [0], [0], [1], [0, 0, 1, 1], [], []>} : vector<8x128xf32>, vector<128x128xf32>, vector<8x128xf32> -> vector<8x128xf32>
    %37 = arith.addf %35, %36 : vector<8x128xf32>
    %38 = math.tanh %37 : vector<8x128xf32>
    %39 = vector.extract_strided_slice %7 {offsets = [56, 0], sizes = [8, 128], strides = [1, 1]} : vector<64x128xf32> to vector<8x128xf32>
    %cst_18 = arith.constant dense<0.000000e+00> : vector<8x128xf32>
    %40 = tpu.matmul %38, %9, %cst_18 {dimension_numbers = #tpu.dot_dimension_numbers<[1], [0], [0], [1], [0, 0, 1, 1], [], []>} : vector<8x128xf32>, vector<128x128xf32>, vector<8x128xf32> -> vector<8x128xf32>
    %41 = arith.addf %39, %40 : vector<8x128xf32>
    %42 = math.tanh %41 : vector<8x128xf32>
    %43 = tpu.concatenate %14, %18, %22, %26, %30, %34, %38, %42 in 0 : vector<8x128xf32>, vector<8x128xf32>, vector<8x128xf32>, vector<8x128xf32>, vector<8x128xf32>, vector<8x128xf32>, vector<8x128xf32>, vector<8x128xf32> -> vector<64x128xf32>
    %c0_19 = arith.constant 0 : index
    %c0_20 = arith.constant 0 : index
    %c0_21 = arith.constant 0 : index
    %44 = vector.load %arg2[%c0_19, %c0_20, %c0_21] : memref<1x128x128xf32, #tpu.memory_space<vmem>>, vector<1x128x128xf32>
    %45 = vector.shape_cast %44 : vector<1x128x128xf32> to vector<128x128xf32>
    %cst_22 = arith.constant dense<0.000000e+00> : vector<64x128xf32>
    %46 = tpu.matmul %43, %45, %cst_22 {dimension_numbers = #tpu.dot_dimension_numbers<[1], [0], [0], [1], [0, 0, 1, 1], [], []>} : vector<64x128xf32>, vector<128x128xf32>, vector<64x128xf32> -> vector<64x128xf32>
    %c1 = arith.constant 1 : index
    %c0_23 = arith.constant 0 : index
    %c0_24 = arith.constant 0 : index
    %47 = vector.load %arg4[%c1, %c0_23, %c0_24] : memref<2x1x128xf32, #tpu.memory_space<vmem>>, vector<1x1x128xf32>
    %48 = vector.shape_cast %47 : vector<1x1x128xf32> to vector<1x128xf32>
    %49 = vector.broadcast %48 : vector<1x128xf32> to vector<64x128xf32>
    %50 = arith.addf %46, %49 : vector<64x128xf32>
    %c1_25 = arith.constant 1 : index
    %c0_26 = arith.constant 0 : index
    %c0_27 = arith.constant 0 : index
    %51 = vector.load %arg3[%c1_25, %c0_26, %c0_27] : memref<2x128x128xf32, #tpu.memory_space<vmem>>, vector<1x128x128xf32>
    %52 = vector.shape_cast %51 : vector<1x128x128xf32> to vector<128x128xf32>
    %cst_28 = arith.constant 0.000000e+00 : f32
    %53 = vector.broadcast %cst_28 : f32 to vector<8x128xf32>
    %54 = vector.extract_strided_slice %50 {offsets = [0, 0], sizes = [8, 128], strides = [1, 1]} : vector<64x128xf32> to vector<8x128xf32>
    %cst_29 = arith.constant dense<0.000000e+00> : vector<8x128xf32>
    %55 = tpu.matmul %53, %52, %cst_29 {dimension_numbers = #tpu.dot_dimension_numbers<[1], [0], [0], [1], [0, 0, 1, 1], [], []>} : vector<8x128xf32>, vector<128x128xf32>, vector<8x128xf32> -> vector<8x128xf32>
    %56 = arith.addf %54, %55 : vector<8x128xf32>
    %57 = math.tanh %56 : vector<8x128xf32>
    %58 = vector.extract_strided_slice %50 {offsets = [8, 0], sizes = [8, 128], strides = [1, 1]} : vector<64x128xf32> to vector<8x128xf32>
    %cst_30 = arith.constant dense<0.000000e+00> : vector<8x128xf32>
    %59 = tpu.matmul %57, %52, %cst_30 {dimension_numbers = #tpu.dot_dimension_numbers<[1], [0], [0], [1], [0, 0, 1, 1], [], []>} : vector<8x128xf32>, vector<128x128xf32>, vector<8x128xf32> -> vector<8x128xf32>
    %60 = arith.addf %58, %59 : vector<8x128xf32>
    %61 = math.tanh %60 : vector<8x128xf32>
    %62 = vector.extract_strided_slice %50 {offsets = [16, 0], sizes = [8, 128], strides = [1, 1]} : vector<64x128xf32> to vector<8x128xf32>
    %cst_31 = arith.constant dense<0.000000e+00> : vector<8x128xf32>
    %63 = tpu.matmul %61, %52, %cst_31 {dimension_numbers = #tpu.dot_dimension_numbers<[1], [0], [0], [1], [0, 0, 1, 1], [], []>} : vector<8x128xf32>, vector<128x128xf32>, vector<8x128xf32> -> vector<8x128xf32>
    %64 = arith.addf %62, %63 : vector<8x128xf32>
    %65 = math.tanh %64 : vector<8x128xf32>
    %66 = vector.extract_strided_slice %50 {offsets = [24, 0], sizes = [8, 128], strides = [1, 1]} : vector<64x128xf32> to vector<8x128xf32>
    %cst_32 = arith.constant dense<0.000000e+00> : vector<8x128xf32>
    %67 = tpu.matmul %65, %52, %cst_32 {dimension_numbers = #tpu.dot_dimension_numbers<[1], [0], [0], [1], [0, 0, 1, 1], [], []>} : vector<8x128xf32>, vector<128x128xf32>, vector<8x128xf32> -> vector<8x128xf32>
    %68 = arith.addf %66, %67 : vector<8x128xf32>
    %69 = math.tanh %68 : vector<8x128xf32>
    %70 = vector.extract_strided_slice %50 {offsets = [32, 0], sizes = [8, 128], strides = [1, 1]} : vector<64x128xf32> to vector<8x128xf32>
    %cst_33 = arith.constant dense<0.000000e+00> : vector<8x128xf32>
    %71 = tpu.matmul %69, %52, %cst_33 {dimension_numbers = #tpu.dot_dimension_numbers<[1], [0], [0], [1], [0, 0, 1, 1], [], []>} : vector<8x128xf32>, vector<128x128xf32>, vector<8x128xf32> -> vector<8x128xf32>
    %72 = arith.addf %70, %71 : vector<8x128xf32>
    %73 = math.tanh %72 : vector<8x128xf32>
    %74 = vector.extract_strided_slice %50 {offsets = [40, 0], sizes = [8, 128], strides = [1, 1]} : vector<64x128xf32> to vector<8x128xf32>
    %cst_34 = arith.constant dense<0.000000e+00> : vector<8x128xf32>
    %75 = tpu.matmul %73, %52, %cst_34 {dimension_numbers = #tpu.dot_dimension_numbers<[1], [0], [0], [1], [0, 0, 1, 1], [], []>} : vector<8x128xf32>, vector<128x128xf32>, vector<8x128xf32> -> vector<8x128xf32>
    %76 = arith.addf %74, %75 : vector<8x128xf32>
    %77 = math.tanh %76 : vector<8x128xf32>
    %78 = vector.extract_strided_slice %50 {offsets = [48, 0], sizes = [8, 128], strides = [1, 1]} : vector<64x128xf32> to vector<8x128xf32>
    %cst_35 = arith.constant dense<0.000000e+00> : vector<8x128xf32>
    %79 = tpu.matmul %77, %52, %cst_35 {dimension_numbers = #tpu.dot_dimension_numbers<[1], [0], [0], [1], [0, 0, 1, 1], [], []>} : vector<8x128xf32>, vector<128x128xf32>, vector<8x128xf32> -> vector<8x128xf32>
    %80 = arith.addf %78, %79 : vector<8x128xf32>
    %81 = math.tanh %80 : vector<8x128xf32>
    %82 = vector.extract_strided_slice %50 {offsets = [56, 0], sizes = [8, 128], strides = [1, 1]} : vector<64x128xf32> to vector<8x128xf32>
    %cst_36 = arith.constant dense<0.000000e+00> : vector<8x128xf32>
    %83 = tpu.matmul %81, %52, %cst_36 {dimension_numbers = #tpu.dot_dimension_numbers<[1], [0], [0], [1], [0, 0, 1, 1], [], []>} : vector<8x128xf32>, vector<128x128xf32>, vector<8x128xf32> -> vector<8x128xf32>
    %84 = arith.addf %82, %83 : vector<8x128xf32>
    %85 = math.tanh %84 : vector<8x128xf32>
    %c0_37 = arith.constant 0 : index
    %c0_38 = arith.constant 0 : index
    %86 = vector.load %arg5[%c0_37, %c0_38] : memref<128x128xf32, #tpu.memory_space<vmem>>, vector<128x128xf32>
    %cst_39 = arith.constant dense<0.000000e+00> : vector<8x128xf32>
    %87 = tpu.matmul %85, %86, %cst_39 {dimension_numbers = #tpu.dot_dimension_numbers<[1], [0], [0], [1], [0, 0, 1, 1], [], []>} : vector<8x128xf32>, vector<128x128xf32>, vector<8x128xf32> -> vector<8x128xf32>
    %c0_40 = arith.constant 0 : index
    %c0_41 = arith.constant 0 : index
    %88 = vector.load %arg6[%c0_40, %c0_41] : memref<1x128xf32, #tpu.memory_space<vmem>>, vector<1x128xf32>
    %89 = vector.broadcast %88 : vector<1x128xf32> to vector<8x128xf32>
    %90 = arith.addf %87, %89 : vector<8x128xf32>
    %c0_42 = arith.constant 0 : index
    %c0_43 = arith.constant 0 : index
    %91 = vector.load %arg7[%c0_42, %c0_43] : memref<8x128xf32, #tpu.memory_space<vmem>>, vector<8x128xf32>
    tpu.vector_store %arg7[%c0_42, %c0_43], %90 {strides = array<i32>} : memref<8x128xf32, #tpu.memory_space<vmem>>, vector<8x128xf32>,
    return
  }
}

</mosaic_0001>

<bundles_post_ra>
// kernel: rnn_model_forward.1
= control target key start
LH: loop header
LB: loop body
LE: loop exit
PB: predicated region body
PF: predicated region fallthrough
CT: control target
= control target key end

     0   :  { %12 = vsyncpa [#allocation3], 0  ;;  %s3518_s0 = inlined_call_operand.vmem [shape: f32[8,8,8], index: 0, kind: input, shape index: {}]   ;;  %s3519_s1 = inlined_call_operand.vmem [shape: f32[8,128], index: 1, kind: input, shape index: {}]   ;;  %s3520_s2 = inlined_call_operand.hbm [shape: f32[1,128,128], index: 2, kind: input, shape index: {}]   ;;  %s3521_s3 = inlined_call_operand.hbm [shape: f32[2,128,128], index: 3, kind: input, shape index: {}]   ;;  %s3522_s4 = inlined_call_operand.vmem [shape: f32[2,1,128], index: 4, kind: input, shape index: {}]   ;;  %s3523_s5 = inlined_call_operand.hbm [shape: f32[128,128], index: 5, kind: input, shape index: {}]   ;;  %s3524_s6 = inlined_call_operand.vmem [shape: f32[1,128], index: 6, kind: input, shape index: {}]   ;;  %s3525_s7 = inlined_call_operand.vmem [shape: f32[8,128], index: 7, kind: output, shape index: {}]  }
   0x1   :  { %13 = vsyncpa [#allocation5], 0  ;;  %s2717_s24 = smov [#allocation4]   ;;  %s2718_s26 = smov [#allocation2]  }
   0x2   :  { %s35_s25 = sshll.u32 %s2717_s24, 4  ;;  %s23_s27 = sshll.u32 %s2718_s26, 4  ;;  %s36_s25 = int_to_ptr.vmem [resolvable:$true] %s35_s25  ;;  %s24_s27 = int_to_ptr.vmem [resolvable:$true] %s23_s27 }
   0x3   :  { %s2661_s28 = scalar_lea.vmem %s36_s25, 4096  ;;  %p2666_p1 = scmp.lt.s32.totalorder %s36_s25, %s36_s25 }
   0x4   :  { %p2662_p0 = scmp.ne.s32.totalorder %s36_s25, %s2661_s28  ;;  %p2667_p2 = scmp.lt.s32.totalorder %s2661_s28, %s2661_s28 }
   0x6   :  { %p2668_p3 = por %p2667_p2, %p2666_p1 }
   0x8   :  { %p2669_p4 = pnand %p2668_p3, %p2662_p0 }
   0xa   :  { %2672 = shalt.err (!%p2669_p4)
}
   0xb   :  { %s2719_s29 = smov 128   ;;  %s2720_s30 = smov 8  }
   0xc   :  { %41 = dma.hbm_to_vmem [thread:$0]  %s3521_s3, 4096, %s36_s25, [#allocation5], %s2719_s29, %s2719_s29, %s2720_s30  }
   0xd   :  { %s2681_s10 = scalar_lea.vmem %s24_s27, 2048  ;;  %p2686_p6 = scmp.lt.s32.totalorder %s24_s27, %s24_s27 }
   0xe   :  { %p2682_p5 = scmp.ne.s32.totalorder %s24_s27, %s2681_s10  ;;  %p2687_p7 = scmp.lt.s32.totalorder %s2681_s10, %s2681_s10 }
  0x10   :  { %p2688_p8 = por %p2687_p7, %p2686_p6 }
  0x12   :  { %p2689_p9 = pnand %p2688_p8, %p2682_p5 }
  0x14   :  { %2692 = shalt.err (!%p2689_p9)
}
  0x15   :  { %29 = dma.hbm_to_vmem [thread:$0]  %s3520_s2, 2048, %s24_s27, [#allocation3], %s2719_s29, %s2719_s29, %s2720_s30  }
  0x16   :  { %s2721_s13 = smov [#allocation6]  }
  0x17   :  { %s49_s14 = sshll.u32 %s2721_s13, 4  ;;  %s50_s14 = int_to_ptr.vmem [resolvable:$true] %s49_s14 }
  0x18   :  { %s2701_s15 = scalar_lea.vmem %s50_s14, 2048  ;;  %p2706_p11 = scmp.lt.s32.totalorder %s50_s14, %s50_s14 }
  0x19   :  { %p2702_p10 = scmp.ne.s32.totalorder %s50_s14, %s2701_s15  ;;  %p2707_p12 = scmp.lt.s32.totalorder %s2701_s15, %s2701_s15 }
  0x1b   :  { %p2708_p13 = por %p2707_p12, %p2706_p11 }
  0x1d   :  { %p2709_p0 = pnand %p2708_p13, %p2702_p10 }
  0x1f   :  { %2712 = shalt.err (!%p2709_p0)
}
  0x20   :  { %55 = dma.hbm_to_vmem [thread:$0]  %s3523_s5, 2048, %s50_s14, [#allocation5], %s2719_s29, %s2719_s29, %s2720_s30  }
  0x21   :  { %2713 = dma.done.wait [#allocation3], 2048  }
  0x22   :  { %2714 = vsyncadd [#allocation3], 4294965248 }
  0x23   :  { %2715 = dma.done.wait [#allocation5], 6144  }
  0x24   :  { %2716 = vsyncadd [#allocation5], 4294961152  ;;  %v2722_v0 = vmov 0.0   ;;  %vm2723_vm0 = vmmov 0   ;;  %v2776_v1 = vld [vmem:[#allocation4 + $0x78] sm:$0xff]  ;;  %v2778_v2 = vld [vmem:[#allocation4 + $0x70] sm:$0xff] }
  0x25   :  { %1975 = vmatprep.subr.mxu1 %v2722_v0  ;;  %2007 = vmatprep.mubr.msk.f32.mxu1 %vm2723_vm0, %v2722_v0  ;;  %v2782_v3 = vld [vmem:[#allocation4 + $0x68] sm:$0xff]  ;;  %v2786_v4 = vld [vmem:[#allocation4 + $0x60] sm:$0xff]  ;;  %vm83_vm1 = vcmask 64512   ;;  %v2799_v8 = vld [vmem:[#allocation4 + $0x58] sm:$0xff] }
  0x26   :  { %1976 = vmatpush3.msra.mxu1 %v2776_v1  ;;  %v75_v5 = vld [vmem:[%s3519_s1] sm:$0xff]  ;;  %v68_v7 = vld [vmem:[%s3518_s0 + $0x8] sm:$0xff]  ;;  %v2804_v9 = vld [vmem:[#allocation4 + $0x50] sm:$0xff] }
  0x27   :  { %1977 = vmatprep.subr.mxu1 %v2722_v0  ;;  %v67_v6 = vld [vmem:[%s3518_s0] sm:$0xff]  ;;  %1961 = vmatprep.subr.mxu0 %v75_v5  ;;  %v2810_v10 = vld [vmem:[#allocation4 + $0x48] sm:$0xff]  ;;  %v2822_v12 = vld [vmem:[#allocation4 + $0x38] sm:$0xff] }
  0x28   :  { %1978 = vmatpush3.msra.mxu1 %v2778_v2  ;;  %1962 = vmatpush3.msra.mxu0 %v75_v5  ;;  %v2816_v11 = vld [vmem:[#allocation4 + $0x40] sm:$0xff]  ;;  %v2828_v13 = vld [vmem:[#allocation4 + $0x30] sm:$0xff]  ;;  %v2834_v14 = vld [vmem:[#allocation4 + $0x28] sm:$0xff] }
  0x29   :  { %1979 = vmatprep.subr.mxu1 %v2722_v0  ;;  %1963 = vmatprep.mubr.msk.f32.mxu0 %vm83_vm1, %v67_v6  ;;  %v2840_v15 = vld [vmem:[#allocation4 + $0x20] sm:$0xff]  ;;  %v2846_v16 = vld [vmem:[#allocation4 + $0x18] sm:$0xff]  ;;  %v2852_v17 = vld [vmem:[#allocation4 + $0x10] sm:$0xff] }
  0x2a   :  { %1980 = vmatpush3.msra.mxu1 %v2782_v3  ;;  %1964 = vmatmul.mubr.msk.f32.vlgmr.msra.gmra.mxu0 %vm83_vm1, %v68_v7  ;;  %v2858_v18 = vld [vmem:[#allocation4 + $0x8] sm:$0xff]  ;;  %v2864_v19 = vld [vmem:[#allocation4] sm:$0xff]  ;;  %v69_v20 = vld [vmem:[%s3518_s0 + $0x10] sm:$0xff] }
  0x2b   :  { %1981 = vmatprep.subr.mxu1 %v2722_v0  ;;  %2010 = vmatprep.subr.mxu0 %v2722_v0  ;;  %v70_v21 = vld [vmem:[%s3518_s0 + $0x18] sm:$0xff]  ;;  %v71_v22 = vld [vmem:[%s3518_s0 + $0x20] sm:$0xff]  ;;  %v72_v23 = vld [vmem:[%s3518_s0 + $0x28] sm:$0xff] }
  0x2c   :  { %1982 = vmatpush3.msra.mxu1 %v2786_v4  ;;  %2011 = vmatpush3.msra.mxu0 %v2776_v1  ;;  %v73_v24 = vld [vmem:[%s3518_s0 + $0x30] sm:$0xff]  ;;  %v74_v25 = vld [vmem:[%s3518_s0 + $0x38] sm:$0xff]  ;;  %v2948_v27 = vld [vmem:[%s3522_s4] ss:$0 sm:$0xff] }
  0x2d   :  { %1983 = vmatprep.subr.mxu1 %v2722_v0  ;;  %2012 = vmatprep.subr.mxu0 %v2722_v0  ;;  %v820_v60 = vld [vmem:[#allocation2 + $0x78] sm:$0xff]  ;;  %v817_v5 = vld [vmem:[#allocation2 + $0x60] sm:$0xff]  ;;  %v815_v7 = vld [vmem:[#allocation2 + $0x50] sm:$0xff] }
  0x2e   :  { %1984 = vmatpush3.msra.mxu1 %v2799_v8  ;;  %2013 = vmatpush3.msra.mxu0 %v2778_v2  ;;  %v816_v6 = vld [vmem:[#allocation2 + $0x58] sm:$0xff] }
  0x2f   :  { %1985 = vmatprep.subr.mxu1 %v2722_v0  ;;  %2014 = vmatprep.subr.mxu0 %v2722_v0 }
  0x30   :  { %1986 = vmatpush3.msra.mxu1 %v2804_v9  ;;  %2015 = vmatpush3.msra.mxu0 %v2782_v3 }
  0x31   :  { %1987 = vmatprep.subr.mxu1 %v2722_v0  ;;  %2016 = vmatprep.subr.mxu0 %v2722_v0 }
  0x32   :  { %1988 = vmatpush3.msra.mxu1 %v2810_v10  ;;  %2017 = vmatpush3.msra.mxu0 %v2786_v4 }
  0x33   :  { %1989 = vmatprep.subr.mxu1 %v2722_v0  ;;  %2018 = vmatprep.subr.mxu0 %v2722_v0 }
  0x34   :  { %1990 = vmatpush3.msra.mxu1 %v2816_v11  ;;  %2019 = vmatpush3.msra.mxu0 %v2799_v8 }
  0x35   :  { %1991 = vmatprep.subr.mxu1 %v2722_v0  ;;  %2020 = vmatprep.subr.mxu0 %v2722_v0 }
  0x36   :  { %1992 = vmatpush3.msra.mxu1 %v2822_v12  ;;  %2021 = vmatpush3.msra.mxu0 %v2804_v9 }
  0x37   :  { %1993 = vmatprep.subr.mxu1 %v2722_v0  ;;  %2022 = vmatprep.subr.mxu0 %v2722_v0 }
  0x38   :  { %1994 = vmatpush3.msra.mxu1 %v2828_v13  ;;  %2023 = vmatpush3.msra.mxu0 %v2810_v10 }
  0x39   :  { %1995 = vmatprep.subr.mxu1 %v2722_v0  ;;  %2024 = vmatprep.subr.mxu0 %v2722_v0 }
  0x3a   :  { %1996 = vmatpush3.msra.mxu1 %v2834_v14  ;;  %2025 = vmatpush3.msra.mxu0 %v2816_v11 }
  0x3b   :  { %1997 = vmatprep.subr.mxu1 %v2722_v0  ;;  %2026 = vmatprep.subr.mxu0 %v2722_v0 }
  0x3c   :  { %1998 = vmatpush3.msra.mxu1 %v2840_v15  ;;  %2027 = vmatpush3.msra.mxu0 %v2822_v12 }
  0x3d   :  { %1999 = vmatprep.subr.mxu1 %v2722_v0  ;;  %2028 = vmatprep.subr.mxu0 %v2722_v0 }
  0x3e   :  { %2000 = vmatpush3.msra.mxu1 %v2846_v16  ;;  %2029 = vmatpush3.msra.mxu0 %v2828_v13 }
  0x3f   :  { %2001 = vmatprep.subr.mxu1 %v2722_v0  ;;  %2030 = vmatprep.subr.mxu0 %v2722_v0 }
  0x40   :  { %2002 = vmatpush3.msra.mxu1 %v2852_v17  ;;  %2031 = vmatpush3.msra.mxu0 %v2834_v14 }
  0x41   :  { %2003 = vmatprep.subr.mxu1 %v2722_v0  ;;  %2032 = vmatprep.subr.mxu0 %v2722_v0 }
  0x42   :  { %2004 = vmatpush3.msra.mxu1 %v2858_v18  ;;  %2033 = vmatpush3.msra.mxu0 %v2840_v15 }
  0x43   :  { %2005 = vmatprep.subr.mxu1 %v2722_v0  ;;  %2034 = vmatprep.subr.mxu0 %v2722_v0 }
  0x44   :  { %2006 = vmatpush3.msra.mxu1 %v2864_v19  ;;  %2035 = vmatpush3.msra.mxu0 %v2846_v16 }
  0x45   :  { %2008 = vmatmul.mubr.f32.vlgmr.msra.gmra.mxu1 %v2722_v0  ;;  %2045 = vmatprep.subr.mxu1 %v2722_v0 }
  0x46   :  { %2046 = vmatpush3.msra.mxu1 %v2776_v1  ;;  %2036 = vmatprep.subr.mxu0 %v2722_v0 }
  0x47   :  { %2047 = vmatprep.subr.mxu1 %v2722_v0  ;;  %2037 = vmatpush3.msra.mxu0 %v2852_v17 }
  0x48   :  { %2048 = vmatpush3.msra.mxu1 %v2778_v2  ;;  %2038 = vmatprep.subr.mxu0 %v2722_v0 }
  0x49   :  { %2049 = vmatprep.subr.mxu1 %v2722_v0  ;;  %2039 = vmatpush3.msra.mxu0 %v2858_v18 }
  0x4a   :  { %2050 = vmatpush3.msra.mxu1 %v2782_v3  ;;  %2040 = vmatprep.subr.mxu0 %v2722_v0 }
  0x4b   :  { %2051 = vmatprep.subr.mxu1 %v2722_v0  ;;  %2041 = vmatpush3.msra.mxu0 %v2864_v19 }
  0x4c   :  { %2052 = vmatpush3.msra.mxu1 %v2786_v4  ;;  %2077 = vmatprep.mubr.msk.f32.mxu1 %vm2723_vm0, %v2722_v0 }
  0x4d   :  { %2053 = vmatprep.subr.mxu1 %v2722_v0  ;;  %2080 = vmatprep.subr.mxu0 %v2722_v0 }
  0x4e   :  { %2054 = vmatpush3.msra.mxu1 %v2799_v8  ;;  %1966 = vmatprep.mubr.msk.f32.mxu0 %vm83_vm1, %v69_v20  ;;  %v3166_v20 = vld [vmem:[#allocation4 + $0xe8] sm:$0xff] }
  0x4f   :  { %2055 = vmatprep.subr.mxu1 %v2722_v0  ;;  %1967 = vmatmul.mubr.msk.f32.gmra.mxu0 %vm83_vm1, %v70_v21  ;;  %v3170_v21 = vld [vmem:[#allocation4 + $0xe0] sm:$0xff] }
  0x50   :  { %2056 = vmatpush3.msra.mxu1 %v2804_v9  ;;  %1969 = vmatprep.mubr.msk.f32.mxu0 %vm83_vm1, %v71_v22  ;;  %v3174_v22 = vld [vmem:[#allocation4 + $0xd8] sm:$0xff] }
  0x51   :  { %2057 = vmatprep.subr.mxu1 %v2722_v0 }
  0x52   :  { %2058 = vmatpush3.msra.mxu1 %v2810_v10 }
  0x53   :  { %2059 = vmatprep.subr.mxu1 %v2722_v0  ;;  %1970 = vmatmul.mubr.msk.f32.gmra.mxu0 %vm83_vm1, %v72_v23  ;;  %v3178_v23 = vld [vmem:[#allocation4 + $0xd0] sm:$0xff] }
  0x54   :  { %2060 = vmatpush3.msra.mxu1 %v2816_v11  ;;  %1972 = vmatprep.mubr.msk.f32.mxu0 %vm83_vm1, %v73_v24  ;;  %v3182_v24 = vld [vmem:[#allocation4 + $0xc8] sm:$0xff] }
  0x55   :  { %2061 = vmatprep.subr.mxu1 %v2722_v0 }
  0x56   :  { %2062 = vmatpush3.msra.mxu1 %v2822_v12 }
  0x57   :  { %2063 = vmatprep.subr.mxu1 %v2722_v0  ;;  %1973 = vmatmul.mubr.msk.f32.gmra.mxu0 %vm83_vm1, %v74_v25  ;;  %v3186_v25 = vld [vmem:[#allocation4 + $0xc0] sm:$0xff] }
  0x58   :  { %2064 = vmatpush3.msra.mxu1 %v2828_v13  ;;  %2042 = vmatprep.mubr.msk.f32.mxu0 %vm2723_vm0, %v2722_v0 }
  0x59   :  { %2065 = vmatprep.subr.mxu1 %v2722_v0 }
  0x5a   :  { %2066 = vmatpush3.msra.mxu1 %v2834_v14 }
  0x5b   :  { %2067 = vmatprep.subr.mxu1 %v2722_v0 }
  0x5c   :  { %2068 = vmatpush3.msra.mxu1 %v2840_v15 }
  0x5d   :  { %2069 = vmatprep.subr.mxu1 %v2722_v0 }
  0x5e   :  { %2070 = vmatpush3.msra.mxu1 %v2846_v16 }
  0x5f   :  { %2071 = vmatprep.subr.mxu1 %v2722_v0 }
  0x60   :  { %2072 = vmatpush3.msra.mxu1 %v2852_v17 }
  0x61   :  { %2073 = vmatprep.subr.mxu1 %v2722_v0 }
  0x62   :  { %2074 = vmatpush3.msra.mxu1 %v2858_v18 }
  0x63   :  { %2075 = vmatprep.subr.mxu1 %v2722_v0 }
  0x64   :  { %2076 = vmatpush3.msra.mxu1 %v2864_v19 }
  0x65   :  { %2115 = vmatprep.subr.mxu1 %v2722_v0 }
  0xea   :  { %v1965_v26 = vpop.f32.mrf.mxu0 }
  0xeb   :  { %v180_v40 = vadd.f32 %v1965_v26, %v2948_v27  ;;  %v3190_v26 = vld [vmem:[#allocation4 + $0xb8] sm:$0xff] }
  0xec   :  { %v174_v28 = vpop.f32.mrf.mxu0 }
  0xed   :  { %v175_v29 = vadd.f32 %v2948_v27, %v174_v28  ;;  %v3194_v28 = vld [vmem:[#allocation4 + $0xb0] sm:$0xff] }
 0x105   :  { %v295_v30 = vpop.f32.mrf.mxu1 }
 0x106   :  { %v299_v31 = vadd.f32 %v295_v30, %v175_v29  ;;  %v3198_v29 = vld [vmem:[#allocation4 + $0xa8] sm:$0xff]  ;;  %v3202_v30 = vld [vmem:[#allocation4 + $0xa0] sm:$0xff] }
 0x107   :  { %v2009_v32 = vpop.f32.mrf.mxu1 }
 0x108   :  { %2621 = vtanh.f32 %v299_v31  ;;  %v3206_v31 = vld [vmem:[#allocation4 + $0x98] sm:$0xff]  ;;  %v3210_v32 = vld [vmem:[#allocation4 + $0x90] sm:$0xff] }
 0x10f   :  { %v2988_v34 = vpop.f32.mrf.mxu0 }
 0x110   :  { %v190_v50 = vadd.f32 %v2988_v34, %v2948_v27  ;;  %v3218_v34 = vld [vmem:[#allocation4 + $0x80] sm:$0xff] }
 0x111   :  { %v184_v35 = vpop.f32.mrf.mxu0 }
 0x112   :  { %v185_v45 = vadd.f32 %v2948_v27, %v184_v35 }
 0x113   :  { %v2990_v36 = vpop.f32.mrf.mxu0 }
 0x114   :  { %v200_v61 = vadd.f32 %v2990_v36, %v2948_v27 }
 0x115   :  { %v2951_v33 = vpop.eup %2621  ;;  %v2992_v37 = vpop.f32.mrf.mxu0 }
 0x116   :  { %2043 = vmatmul.mubr.f32.vlgmr.msra.gmra.mxu0 %v2951_v33  ;;  %v195_v55 = vadd.f32 %v2948_v27, %v2992_v37 }
 0x117   :  { %2081 = vmatpush3.msra.mxu0 %v2776_v1  ;;  %2112 = vmatprep.mubr.msk.f32.mxu0 %vm2723_vm0, %v2722_v0  ;;  %v2994_v38 = vpop.f32.mrf.mxu0 }
 0x118   :  { %2082 = vmatprep.subr.mxu0 %v2722_v0 }
 0x119   :  { %2083 = vmatpush3.msra.mxu0 %v2778_v2  ;;  %v2996_v39 = vpop.f32.mrf.mxu0 }
 0x11a   :  { %2084 = vmatprep.subr.mxu0 %v2722_v0  ;;  %v205_v35 = vadd.f32 %v2948_v27, %v2996_v39  ;;  %v210_v39 = vadd.f32 %v2994_v38, %v2948_v27 }
 0x11b   :  { %2085 = vmatpush3.msra.mxu0 %v2782_v3 }
 0x11c   :  { %2086 = vmatprep.subr.mxu0 %v2722_v0 }
 0x11d   :  { %2087 = vmatpush3.msra.mxu0 %v2786_v4 }
 0x11e   :  { %2088 = vmatprep.subr.mxu0 %v2722_v0 }
 0x11f   :  { %2089 = vmatpush3.msra.mxu0 %v2799_v8 }
 0x120   :  { %2090 = vmatprep.subr.mxu0 %v2722_v0 }
 0x121   :  { %2091 = vmatpush3.msra.mxu0 %v2804_v9 }
 0x122   :  { %2092 = vmatprep.subr.mxu0 %v2722_v0 }
 0x123   :  { %2093 = vmatpush3.msra.mxu0 %v2810_v10 }
 0x124   :  { %2094 = vmatprep.subr.mxu0 %v2722_v0 }
 0x125   :  { %2095 = vmatpush3.msra.mxu0 %v2816_v11 }
 0x126   :  { %2096 = vmatprep.subr.mxu0 %v2722_v0 }
 0x127   :  { %2097 = vmatpush3.msra.mxu0 %v2822_v12 }
 0x128   :  { %2098 = vmatprep.subr.mxu0 %v2722_v0 }
 0x129   :  { %2099 = vmatpush3.msra.mxu0 %v2828_v13 }
 0x12a   :  { %2100 = vmatprep.subr.mxu0 %v2722_v0 }
 0x12b   :  { %2101 = vmatpush3.msra.mxu0 %v2834_v14 }
 0x12c   :  { %2102 = vmatprep.subr.mxu0 %v2722_v0 }
 0x12d   :  { %2103 = vmatpush3.msra.mxu0 %v2840_v15 }
 0x12e   :  { %2104 = vmatprep.subr.mxu0 %v2722_v0 }
 0x12f   :  { %2105 = vmatpush3.msra.mxu0 %v2846_v16 }
 0x130   :  { %2106 = vmatprep.subr.mxu0 %v2722_v0 }
 0x131   :  { %2107 = vmatpush3.msra.mxu0 %v2852_v17 }
 0x132   :  { %2108 = vmatprep.subr.mxu0 %v2722_v0 }
 0x133   :  { %2109 = vmatpush3.msra.mxu0 %v2858_v18 }
 0x134   :  { %2110 = vmatprep.subr.mxu0 %v2722_v0 }
 0x135   :  { %2111 = vmatpush3.msra.mxu0 %v2864_v19 }
 0x136   :  { %2150 = vmatprep.subr.mxu0 %v2722_v0 }
 0x1d6   :  { %v367_v41 = vpop.f32.mrf.mxu0 }
 0x1d7   :  { %v371_v42 = vadd.f32 %v367_v41, %v180_v40 }
 0x1d8   :  { %v2044_v43 = vpop.f32.mrf.mxu0 }
 0x1d9   :  { %2623 = vtanh.f32 %v371_v42 }
 0x1e6   :  { %v2999_v44 = vpop.eup %2623 }
 0x1e7   :  { %2078 = vmatmul.mubr.f32.vlgmr.msra.gmra.mxu1 %v2999_v44 }
 0x1e8   :  { %2116 = vmatpush3.msra.mxu1 %v2776_v1  ;;  %2147 = vmatprep.mubr.msk.f32.mxu1 %vm2723_vm0, %v2722_v0 }
 0x1e9   :  { %2117 = vmatprep.subr.mxu1 %v2722_v0 }
 0x1ea   :  { %2118 = vmatpush3.msra.mxu1 %v2778_v2 }
 0x1eb   :  { %2119 = vmatprep.subr.mxu1 %v2722_v0 }
 0x1ec   :  { %2120 = vmatpush3.msra.mxu1 %v2782_v3 }
 0x1ed   :  { %2121 = vmatprep.subr.mxu1 %v2722_v0 }
 0x1ee   :  { %2122 = vmatpush3.msra.mxu1 %v2786_v4 }
 0x1ef   :  { %2123 = vmatprep.subr.mxu1 %v2722_v0 }
 0x1f0   :  { %2124 = vmatpush3.msra.mxu1 %v2799_v8 }
 0x1f1   :  { %2125 = vmatprep.subr.mxu1 %v2722_v0 }
 0x1f2   :  { %2126 = vmatpush3.msra.mxu1 %v2804_v9 }
 0x1f3   :  { %2127 = vmatprep.subr.mxu1 %v2722_v0 }
 0x1f4   :  { %2128 = vmatpush3.msra.mxu1 %v2810_v10 }
 0x1f5   :  { %2129 = vmatprep.subr.mxu1 %v2722_v0 }
 0x1f6   :  { %2130 = vmatpush3.msra.mxu1 %v2816_v11 }
 0x1f7   :  { %2131 = vmatprep.subr.mxu1 %v2722_v0 }
 0x1f8   :  { %2132 = vmatpush3.msra.mxu1 %v2822_v12 }
 0x1f9   :  { %2133 = vmatprep.subr.mxu1 %v2722_v0 }
 0x1fa   :  { %2134 = vmatpush3.msra.mxu1 %v2828_v13 }
 0x1fb   :  { %2135 = vmatprep.subr.mxu1 %v2722_v0 }
 0x1fc   :  { %2136 = vmatpush3.msra.mxu1 %v2834_v14 }
 0x1fd   :  { %2137 = vmatprep.subr.mxu1 %v2722_v0 }
 0x1fe   :  { %2138 = vmatpush3.msra.mxu1 %v2840_v15 }
 0x1ff   :  { %2139 = vmatprep.subr.mxu1 %v2722_v0 }
 0x200   :  { %2140 = vmatpush3.msra.mxu1 %v2846_v16 }
 0x201   :  { %2141 = vmatprep.subr.mxu1 %v2722_v0 }
 0x202   :  { %2142 = vmatpush3.msra.mxu1 %v2852_v17 }
 0x203   :  { %2143 = vmatprep.subr.mxu1 %v2722_v0 }
 0x204   :  { %2144 = vmatpush3.msra.mxu1 %v2858_v18 }
 0x205   :  { %2145 = vmatprep.subr.mxu1 %v2722_v0 }
 0x206   :  { %2146 = vmatpush3.msra.mxu1 %v2864_v19 }
 0x207   :  { %2185 = vmatprep.subr.mxu1 %v2722_v0 }
 0x2a7   :  { %v439_v46 = vpop.f32.mrf.mxu1 }
 0x2a8   :  { %v443_v47 = vadd.f32 %v439_v46, %v185_v45 }
 0x2a9   :  { %v2079_v48 = vpop.f32.mrf.mxu1 }
 0x2aa   :  { %2625 = vtanh.f32 %v443_v47  ;;  %v3301_v48 = vld [vmem:[%s3522_s4 + $0x1] ss:$0 sm:$0xff] }
 0x2b7   :  { %v3037_v49 = vpop.eup %2625 }
 0x2b8   :  { %2113 = vmatmul.mubr.f32.vlgmr.msra.gmra.mxu0 %v3037_v49 }
 0x2b9   :  { %2151 = vmatpush3.msra.mxu0 %v2776_v1  ;;  %2182 = vmatprep.mubr.msk.f32.mxu0 %vm2723_vm0, %v2722_v0 }
 0x2ba   :  { %2152 = vmatprep.subr.mxu0 %v2722_v0 }
 0x2bb   :  { %2153 = vmatpush3.msra.mxu0 %v2778_v2 }
 0x2bc   :  { %2154 = vmatprep.subr.mxu0 %v2722_v0 }
 0x2bd   :  { %2155 = vmatpush3.msra.mxu0 %v2782_v3 }
 0x2be   :  { %2156 = vmatprep.subr.mxu0 %v2722_v0 }
 0x2bf   :  { %2157 = vmatpush3.msra.mxu0 %v2786_v4 }
 0x2c0   :  { %2158 = vmatprep.subr.mxu0 %v2722_v0 }
 0x2c1   :  { %2159 = vmatpush3.msra.mxu0 %v2799_v8 }
 0x2c2   :  { %2160 = vmatprep.subr.mxu0 %v2722_v0 }
 0x2c3   :  { %2161 = vmatpush3.msra.mxu0 %v2804_v9 }
 0x2c4   :  { %2162 = vmatprep.subr.mxu0 %v2722_v0 }
 0x2c5   :  { %2163 = vmatpush3.msra.mxu0 %v2810_v10 }
 0x2c6   :  { %2164 = vmatprep.subr.mxu0 %v2722_v0 }
 0x2c7   :  { %2165 = vmatpush3.msra.mxu0 %v2816_v11 }
 0x2c8   :  { %2166 = vmatprep.subr.mxu0 %v2722_v0 }
 0x2c9   :  { %2167 = vmatpush3.msra.mxu0 %v2822_v12 }
 0x2ca   :  { %2168 = vmatprep.subr.mxu0 %v2722_v0 }
 0x2cb   :  { %2169 = vmatpush3.msra.mxu0 %v2828_v13 }
 0x2cc   :  { %2170 = vmatprep.subr.mxu0 %v2722_v0 }
 0x2cd   :  { %2171 = vmatpush3.msra.mxu0 %v2834_v14 }
 0x2ce   :  { %2172 = vmatprep.subr.mxu0 %v2722_v0 }
 0x2cf   :  { %2173 = vmatpush3.msra.mxu0 %v2840_v15 }
 0x2d0   :  { %2174 = vmatprep.subr.mxu0 %v2722_v0 }
 0x2d1   :  { %2175 = vmatpush3.msra.mxu0 %v2846_v16 }
 0x2d2   :  { %2176 = vmatprep.subr.mxu0 %v2722_v0 }
 0x2d3   :  { %2177 = vmatpush3.msra.mxu0 %v2852_v17 }
 0x2d4   :  { %2178 = vmatprep.subr.mxu0 %v2722_v0 }
 0x2d5   :  { %2179 = vmatpush3.msra.mxu0 %v2858_v18 }
 0x2d6   :  { %2180 = vmatprep.subr.mxu0 %v2722_v0 }
 0x2d7   :  { %2181 = vmatpush3.msra.mxu0 %v2864_v19 }
 0x2d8   :  { %2220 = vmatprep.subr.mxu0 %v2722_v0 }
 0x378   :  { %v511_v51 = vpop.f32.mrf.mxu0 }
 0x379   :  { %v515_v52 = vadd.f32 %v511_v51, %v190_v50 }
 0x37a   :  { %v2114_v53 = vpop.f32.mrf.mxu0 }
 0x37b   :  { %2627 = vtanh.f32 %v515_v52 }
 0x388   :  { %v3076_v54 = vpop.eup %2627 }
 0x389   :  { %2148 = vmatmul.mubr.f32.vlgmr.msra.gmra.mxu1 %v3076_v54 }
 0x38a   :  { %2186 = vmatpush3.msra.mxu1 %v2776_v1  ;;  %2217 = vmatprep.mubr.msk.f32.mxu1 %vm2723_vm0, %v2722_v0 }
 0x38b   :  { %2187 = vmatprep.subr.mxu1 %v2722_v0 }
 0x38c   :  { %2188 = vmatpush3.msra.mxu1 %v2778_v2 }
 0x38d   :  { %2189 = vmatprep.subr.mxu1 %v2722_v0 }
 0x38e   :  { %2190 = vmatpush3.msra.mxu1 %v2782_v3 }
 0x38f   :  { %2191 = vmatprep.subr.mxu1 %v2722_v0 }
 0x390   :  { %2192 = vmatpush3.msra.mxu1 %v2786_v4 }
 0x391   :  { %2193 = vmatprep.subr.mxu1 %v2722_v0 }
 0x392   :  { %2194 = vmatpush3.msra.mxu1 %v2799_v8 }
 0x393   :  { %2195 = vmatprep.subr.mxu1 %v2722_v0 }
 0x394   :  { %2196 = vmatpush3.msra.mxu1 %v2804_v9 }
 0x395   :  { %2197 = vmatprep.subr.mxu1 %v2722_v0 }
 0x396   :  { %2198 = vmatpush3.msra.mxu1 %v2810_v10 }
 0x397   :  { %2199 = vmatprep.subr.mxu1 %v2722_v0 }
 0x398   :  { %2200 = vmatpush3.msra.mxu1 %v2816_v11 }
 0x399   :  { %2201 = vmatprep.subr.mxu1 %v2722_v0 }
 0x39a   :  { %2202 = vmatpush3.msra.mxu1 %v2822_v12 }
 0x39b   :  { %2203 = vmatprep.subr.mxu1 %v2722_v0 }
 0x39c   :  { %2204 = vmatpush3.msra.mxu1 %v2828_v13 }
 0x39d   :  { %2205 = vmatprep.subr.mxu1 %v2722_v0 }
 0x39e   :  { %2206 = vmatpush3.msra.mxu1 %v2834_v14 }
 0x39f   :  { %2207 = vmatprep.subr.mxu1 %v2722_v0 }
 0x3a0   :  { %2208 = vmatpush3.msra.mxu1 %v2840_v15 }
 0x3a1   :  { %2209 = vmatprep.subr.mxu1 %v2722_v0 }
 0x3a2   :  { %2210 = vmatpush3.msra.mxu1 %v2846_v16 }
 0x3a3   :  { %2211 = vmatprep.subr.mxu1 %v2722_v0 }
 0x3a4   :  { %2212 = vmatpush3.msra.mxu1 %v2852_v17 }
 0x3a5   :  { %2213 = vmatprep.subr.mxu1 %v2722_v0 }
 0x3a6   :  { %2214 = vmatpush3.msra.mxu1 %v2858_v18 }
 0x3a7   :  { %2215 = vmatprep.subr.mxu1 %v2722_v0 }
 0x3a8   :  { %2216 = vmatpush3.msra.mxu1 %v2864_v19 }
 0x3a9   :  { %2255 = vmatprep.subr.mxu1 %v820_v60 }
 0x449   :  { %v583_v56 = vpop.f32.mrf.mxu1 }
 0x44a   :  { %v587_v57 = vadd.f32 %v583_v56, %v195_v55 }
 0x44b   :  { %v2149_v58 = vpop.f32.mrf.mxu1 }
 0x44c   :  { %2629 = vtanh.f32 %v587_v57 }
 0x459   :  { %v3114_v59 = vpop.eup %2629 }
 0x45a   :  { %2183 = vmatmul.mubr.f32.vlgmr.msra.gmra.mxu0 %v3114_v59 }
 0x45b   :  { %2221 = vmatpush3.msra.mxu0 %v2776_v1  ;;  %2252 = vmatprep.mubr.msk.f32.mxu0 %vm2723_vm0, %v2722_v0 }
 0x45c   :  { %2222 = vmatprep.subr.mxu0 %v2722_v0 }
 0x45d   :  { %2223 = vmatpush3.msra.mxu0 %v2778_v2 }
 0x45e   :  { %2224 = vmatprep.subr.mxu0 %v2722_v0 }
 0x45f   :  { %2225 = vmatpush3.msra.mxu0 %v2782_v3  ;;  %v819_v3 = vld [vmem:[#allocation2 + $0x70] sm:$0xff] }
 0x460   :  { %2226 = vmatprep.subr.mxu0 %v2722_v0 }
 0x461   :  { %2227 = vmatpush3.msra.mxu0 %v2786_v4  ;;  %v818_v4 = vld [vmem:[#allocation2 + $0x68] sm:$0xff] }
 0x462   :  { %2228 = vmatprep.subr.mxu0 %v2722_v0 }
 0x463   :  { %2229 = vmatpush3.msra.mxu0 %v2799_v8  ;;  %v814_v8 = vld [vmem:[#allocation2 + $0x48] sm:$0xff] }
 0x464   :  { %2230 = vmatprep.subr.mxu0 %v2722_v0 }
 0x465   :  { %2231 = vmatpush3.msra.mxu0 %v2804_v9  ;;  %v813_v9 = vld [vmem:[#allocation2 + $0x40] sm:$0xff] }
 0x466   :  { %2232 = vmatprep.subr.mxu0 %v2722_v0 }
 0x467   :  { %2233 = vmatpush3.msra.mxu0 %v2810_v10  ;;  %v812_v10 = vld [vmem:[#allocation2 + $0x38] sm:$0xff] }
 0x468   :  { %2234 = vmatprep.subr.mxu0 %v2722_v0 }
 0x469   :  { %2235 = vmatpush3.msra.mxu0 %v2816_v11  ;;  %v811_v11 = vld [vmem:[#allocation2 + $0x30] sm:$0xff] }
 0x46a   :  { %2236 = vmatprep.subr.mxu0 %v2722_v0 }
 0x46b   :  { %2237 = vmatpush3.msra.mxu0 %v2822_v12  ;;  %v810_v12 = vld [vmem:[#allocation2 + $0x28] sm:$0xff] }
 0x46c   :  { %2238 = vmatprep.subr.mxu0 %v2722_v0 }
 0x46d   :  { %2239 = vmatpush3.msra.mxu0 %v2828_v13  ;;  %v809_v13 = vld [vmem:[#allocation2 + $0x20] sm:$0xff] }
 0x46e   :  { %2240 = vmatprep.subr.mxu0 %v2722_v0 }
 0x46f   :  { %2241 = vmatpush3.msra.mxu0 %v2834_v14  ;;  %v808_v14 = vld [vmem:[#allocation2 + $0x18] sm:$0xff] }
 0x470   :  { %2242 = vmatprep.subr.mxu0 %v2722_v0 }
 0x471   :  { %2243 = vmatpush3.msra.mxu0 %v2840_v15  ;;  %v807_v15 = vld [vmem:[#allocation2 + $0x10] sm:$0xff] }
 0x472   :  { %2244 = vmatprep.subr.mxu0 %v2722_v0 }
 0x473   :  { %2245 = vmatpush3.msra.mxu0 %v2846_v16  ;;  %v806_v16 = vld [vmem:[#allocation2 + $0x8] sm:$0xff] }
 0x474   :  { %2246 = vmatprep.subr.mxu0 %v2722_v0 }
 0x475   :  { %2247 = vmatpush3.msra.mxu0 %v2852_v17  ;;  %v805_v17 = vld [vmem:[#allocation2] sm:$0xff] }
 0x476   :  { %2248 = vmatprep.subr.mxu0 %v2722_v0 }
 0x477   :  { %2249 = vmatpush3.msra.mxu0 %v2858_v18  ;;  %v3159_v18 = vld [vmem:[#allocation4 + $0xf8] sm:$0xff] }
 0x478   :  { %2250 = vmatprep.subr.mxu0 %v2722_v0 }
 0x479   :  { %2251 = vmatpush3.msra.mxu0 %v2864_v19  ;;  %v3162_v19 = vld [vmem:[#allocation4 + $0xf0] sm:$0xff] }
 0x47a   :  { %2299 = vmatprep.subr.mxu0 %v2722_v0 }
 0x51a   :  { %v655_v62 = vpop.f32.mrf.mxu0 }
 0x51b   :  { %v659_v63 = vadd.f32 %v655_v62, %v200_v61 }
 0x51c   :  { %v2184_v1 = vpop.f32.mrf.mxu0 }
 0x51d   :  { %2631 = vtanh.f32 %v659_v63 }
 0x52a   :  { %v2632_v2 = vpop.eup %2631 }
 0x52b   :  { %2218 = vmatmul.mubr.f32.vlgmr.msra.gmra.mxu1 %v2632_v2 }
 0x52c   :  { %2256 = vmatpush3.msra.mxu1 %v820_v60  ;;  %2287 = vmatprep.mubr.f32.mxu1 %v2951_v33  ;;  %v3214_v33 = vld [vmem:[#allocation4 + $0x88] sm:$0xff] }
 0x52d   :  { %2257 = vmatprep.subr.mxu1 %v819_v3 }
 0x52e   :  { %2258 = vmatpush3.msra.mxu1 %v819_v3 }
 0x52f   :  { %2259 = vmatprep.subr.mxu1 %v818_v4 }
 0x530   :  { %2260 = vmatpush3.msra.mxu1 %v818_v4 }
 0x531   :  { %2261 = vmatprep.subr.mxu1 %v817_v5 }
 0x532   :  { %2262 = vmatpush3.msra.mxu1 %v817_v5 }
 0x533   :  { %2263 = vmatprep.subr.mxu1 %v816_v6 }
 0x534   :  { %2264 = vmatpush3.msra.mxu1 %v816_v6 }
 0x535   :  { %2265 = vmatprep.subr.mxu1 %v815_v7 }
 0x536   :  { %2266 = vmatpush3.msra.mxu1 %v815_v7 }
 0x537   :  { %2267 = vmatprep.subr.mxu1 %v814_v8 }
 0x538   :  { %2268 = vmatpush3.msra.mxu1 %v814_v8 }
 0x539   :  { %2269 = vmatprep.subr.mxu1 %v813_v9 }
 0x53a   :  { %2270 = vmatpush3.msra.mxu1 %v813_v9 }
 0x53b   :  { %2271 = vmatprep.subr.mxu1 %v812_v10 }
 0x53c   :  { %2272 = vmatpush3.msra.mxu1 %v812_v10 }
 0x53d   :  { %2273 = vmatprep.subr.mxu1 %v811_v11 }
 0x53e   :  { %2274 = vmatpush3.msra.mxu1 %v811_v11 }
 0x53f   :  { %2275 = vmatprep.subr.mxu1 %v810_v12 }
 0x540   :  { %2276 = vmatpush3.msra.mxu1 %v810_v12 }
 0x541   :  { %2277 = vmatprep.subr.mxu1 %v809_v13 }
 0x542   :  { %2278 = vmatpush3.msra.mxu1 %v809_v13 }
 0x543   :  { %2279 = vmatprep.subr.mxu1 %v808_v14 }
 0x544   :  { %2280 = vmatpush3.msra.mxu1 %v808_v14 }
 0x545   :  { %2281 = vmatprep.subr.mxu1 %v807_v15 }
 0x546   :  { %2282 = vmatpush3.msra.mxu1 %v807_v15 }
 0x547   :  { %2283 = vmatprep.subr.mxu1 %v806_v16 }
 0x548   :  { %2284 = vmatpush3.msra.mxu1 %v806_v16 }
 0x549   :  { %2285 = vmatprep.subr.mxu1 %v805_v17 }
 0x54a   :  { %2286 = vmatpush3.msra.mxu1 %v805_v17 }
 0x54b   :  { %2288 = vmatmul.mubr.f32.vlgmr.msra.gmra.mxu1 %v2999_v44  ;;  %2334 = vmatprep.subr.mxu1 %v2722_v0 }
 0x54c   :  { %2290 = vmatprep.mubr.f32.mxu1 %v3037_v49  ;;  %2335 = vmatpush3.msra.mxu1 %v3159_v18 }
 0x54d   :  { %2336 = vmatprep.subr.mxu1 %v2722_v0 }
 0x54e   :  { %2337 = vmatpush3.msra.mxu1 %v3162_v19 }
 0x54f   :  { %2291 = vmatmul.mubr.f32.gmra.mxu1 %v3076_v54  ;;  %2338 = vmatprep.subr.mxu1 %v2722_v0 }
 0x550   :  { %2293 = vmatprep.mubr.f32.mxu1 %v3114_v59  ;;  %2339 = vmatpush3.msra.mxu1 %v3166_v20 }
 0x551   :  { %2340 = vmatprep.subr.mxu1 %v2722_v0 }
 0x552   :  { %2341 = vmatpush3.msra.mxu1 %v3170_v21 }
 0x553   :  { %2294 = vmatmul.mubr.f32.gmra.mxu1 %v2632_v2  ;;  %2342 = vmatprep.subr.mxu1 %v2722_v0 }
 0x554   :  { %2343 = vmatpush3.msra.mxu1 %v3174_v22 }
 0x555   :  { %2344 = vmatprep.subr.mxu1 %v2722_v0 }
 0x556   :  { %2345 = vmatpush3.msra.mxu1 %v3178_v23 }
 0x557   :  { %2346 = vmatprep.subr.mxu1 %v2722_v0 }
 0x558   :  { %2347 = vmatpush3.msra.mxu1 %v3182_v24 }
 0x559   :  { %2348 = vmatprep.subr.mxu1 %v2722_v0 }
 0x55a   :  { %2349 = vmatpush3.msra.mxu1 %v3186_v25 }
 0x55b   :  { %2350 = vmatprep.subr.mxu1 %v2722_v0 }
 0x55c   :  { %2351 = vmatpush3.msra.mxu1 %v3190_v26 }
 0x55d   :  { %2352 = vmatprep.subr.mxu1 %v2722_v0 }
 0x55e   :  { %2353 = vmatpush3.msra.mxu1 %v3194_v28 }
 0x55f   :  { %2354 = vmatprep.subr.mxu1 %v2722_v0 }
 0x560   :  { %2355 = vmatpush3.msra.mxu1 %v3198_v29 }
 0x561   :  { %2356 = vmatprep.subr.mxu1 %v2722_v0 }
 0x562   :  { %2357 = vmatpush3.msra.mxu1 %v3202_v30 }
 0x563   :  { %2358 = vmatprep.subr.mxu1 %v2722_v0 }
 0x564   :  { %2359 = vmatpush3.msra.mxu1 %v3206_v31 }
 0x565   :  { %2360 = vmatprep.subr.mxu1 %v2722_v0 }
 0x566   :  { %2361 = vmatpush3.msra.mxu1 %v3210_v32 }
 0x567   :  { %2362 = vmatprep.subr.mxu1 %v2722_v0 }
 0x568   :  { %2363 = vmatpush3.msra.mxu1 %v3214_v33 }
 0x569   :  { %2364 = vmatprep.subr.mxu1 %v2722_v0 }
 0x56a   :  { %2365 = vmatpush3.msra.mxu1 %v3218_v34 }
 0x56b   :  { %2404 = vmatprep.subr.mxu1 %v2722_v0 }
 0x5eb   :  { %v727_v36 = vpop.f32.mrf.mxu1 }
 0x5ec   :  { %v731_v37 = vadd.f32 %v727_v36, %v205_v35  ;;  %v1533_v35 = vld [vmem:[#allocation6 + $0x30] sm:$0xff]  ;;  %v1532_v36 = vld [vmem:[#allocation6 + $0x28] sm:$0xff] }
 0x5ed   :  { %v2219_v40 = vpop.f32.mrf.mxu1 }
 0x5ee   :  { %2633 = vtanh.f32 %v731_v37  ;;  %v1531_v37 = vld [vmem:[#allocation6 + $0x20] sm:$0xff]  ;;  %v1530_v40 = vld [vmem:[#allocation6 + $0x18] sm:$0xff] }
 0x5fb   :  { %v2634_v41 = vpop.eup %2633 }
 0x5fc   :  { %2253 = vmatmul.mubr.f32.vlgmr.msra.gmra.mxu0 %v2634_v41  ;;  %2296 = vmatprep.mubr.f32.mxu1 %v2634_v41  ;;  %v1529_v41 = vld [vmem:[#allocation6 + $0x10] sm:$0xff] }
 0x5fd   :  { %2300 = vmatpush3.msra.mxu0 %v3159_v18  ;;  %2331 = vmatprep.mubr.msk.f32.mxu0 %vm2723_vm0, %v2722_v0 }
 0x5fe   :  { %2301 = vmatprep.subr.mxu0 %v2722_v0 }
 0x5ff   :  { %2302 = vmatpush3.msra.mxu0 %v3162_v19 }
 0x600   :  { %2303 = vmatprep.subr.mxu0 %v2722_v0 }
 0x601   :  { %2304 = vmatpush3.msra.mxu0 %v3166_v20 }
 0x602   :  { %2305 = vmatprep.subr.mxu0 %v2722_v0 }
 0x603   :  { %2306 = vmatpush3.msra.mxu0 %v3170_v21 }
 0x604   :  { %2307 = vmatprep.subr.mxu0 %v2722_v0 }
 0x605   :  { %2308 = vmatpush3.msra.mxu0 %v3174_v22 }
 0x606   :  { %2309 = vmatprep.subr.mxu0 %v2722_v0 }
 0x607   :  { %2310 = vmatpush3.msra.mxu0 %v3178_v23 }
 0x608   :  { %2311 = vmatprep.subr.mxu0 %v2722_v0 }
 0x609   :  { %2312 = vmatpush3.msra.mxu0 %v3182_v24 }
 0x60a   :  { %2313 = vmatprep.subr.mxu0 %v2722_v0 }
 0x60b   :  { %2314 = vmatpush3.msra.mxu0 %v3186_v25  ;;  %v2289_v46 = vpop.f32.mrf.mxu1 }
 0x60c   :  { %2315 = vmatprep.subr.mxu0 %v2722_v0  ;;  %v901_v58 = vadd.f32 %v2289_v46, %v3301_v48 }
 0x60d   :  { %2316 = vmatpush3.msra.mxu0 %v3190_v26  ;;  %v895_v47 = vpop.f32.mrf.mxu1 }
 0x60e   :  { %2317 = vmatprep.subr.mxu0 %v2722_v0  ;;  %v896_v49 = vadd.f32 %v3301_v48, %v895_v47 }
 0x60f   :  { %2318 = vmatpush3.msra.mxu0 %v3194_v28  ;;  %v3338_v52 = vpop.f32.mrf.mxu1 }
 0x610   :  { %2319 = vmatprep.subr.mxu0 %v2722_v0  ;;  %v911_v5 = vadd.f32 %v3338_v52, %v3301_v48 }
 0x611   :  { %2320 = vmatpush3.msra.mxu0 %v3198_v29  ;;  %v905_v53 = vpop.f32.mrf.mxu1 }
 0x612   :  { %2321 = vmatprep.subr.mxu0 %v2722_v0  ;;  %v906_v63 = vadd.f32 %v3301_v48, %v905_v53 }
 0x613   :  { %2322 = vmatpush3.msra.mxu0 %v3202_v30  ;;  %v3340_v54 = vpop.f32.mrf.mxu1 }
 0x614   :  { %2323 = vmatprep.subr.mxu0 %v2722_v0  ;;  %v921_v15 = vadd.f32 %v3340_v54, %v3301_v48 }
 0x615   :  { %2324 = vmatpush3.msra.mxu0 %v3206_v31  ;;  %v3342_v55 = vpop.f32.mrf.mxu1 }
 0x616   :  { %2325 = vmatprep.subr.mxu0 %v2722_v0  ;;  %v916_v10 = vadd.f32 %v3301_v48, %v3342_v55 }
 0x617   :  { %2326 = vmatpush3.msra.mxu0 %v3210_v32 }
 0x618   :  { %2327 = vmatprep.subr.mxu0 %v2722_v0 }
 0x619   :  { %2328 = vmatpush3.msra.mxu0 %v3214_v33 }
 0x61a   :  { %2329 = vmatprep.subr.mxu0 %v2722_v0 }
 0x61b   :  { %2330 = vmatpush3.msra.mxu0 %v3218_v34 }
 0x61c   :  { %2332 = vmatmul.mubr.f32.vlgmr.msra.gmra.mxu0 %v2722_v0  ;;  %2369 = vmatprep.subr.mxu0 %v2722_v0 }
 0x61d   :  { %2370 = vmatpush3.msra.mxu0 %v3159_v18  ;;  %2401 = vmatprep.mubr.msk.f32.mxu0 %vm2723_vm0, %v2722_v0 }
 0x61e   :  { %2371 = vmatprep.subr.mxu0 %v2722_v0 }
 0x61f   :  { %2372 = vmatpush3.msra.mxu0 %v3162_v19 }
 0x620   :  { %2373 = vmatprep.subr.mxu0 %v2722_v0 }
 0x621   :  { %2374 = vmatpush3.msra.mxu0 %v3166_v20 }
 0x622   :  { %2375 = vmatprep.subr.mxu0 %v2722_v0 }
 0x623   :  { %2376 = vmatpush3.msra.mxu0 %v3170_v21 }
 0x624   :  { %2377 = vmatprep.subr.mxu0 %v2722_v0 }
 0x625   :  { %2378 = vmatpush3.msra.mxu0 %v3174_v22 }
 0x626   :  { %2379 = vmatprep.subr.mxu0 %v2722_v0 }
 0x627   :  { %2380 = vmatpush3.msra.mxu0 %v3178_v23 }
 0x628   :  { %2381 = vmatprep.subr.mxu0 %v2722_v0 }
 0x629   :  { %2382 = vmatpush3.msra.mxu0 %v3182_v24 }
 0x62a   :  { %2383 = vmatprep.subr.mxu0 %v2722_v0 }
 0x62b   :  { %2384 = vmatpush3.msra.mxu0 %v3186_v25 }
 0x62c   :  { %2385 = vmatprep.subr.mxu0 %v2722_v0 }
 0x62d   :  { %2386 = vmatpush3.msra.mxu0 %v3190_v26 }
 0x62e   :  { %2387 = vmatprep.subr.mxu0 %v2722_v0 }
 0x62f   :  { %2388 = vmatpush3.msra.mxu0 %v3194_v28 }
 0x630   :  { %2389 = vmatprep.subr.mxu0 %v2722_v0 }
 0x631   :  { %2390 = vmatpush3.msra.mxu0 %v3198_v29 }
 0x632   :  { %2391 = vmatprep.subr.mxu0 %v2722_v0 }
 0x633   :  { %2392 = vmatpush3.msra.mxu0 %v3202_v30 }
 0x634   :  { %2393 = vmatprep.subr.mxu0 %v2722_v0 }
 0x635   :  { %2394 = vmatpush3.msra.mxu0 %v3206_v31 }
 0x636   :  { %2395 = vmatprep.subr.mxu0 %v2722_v0 }
 0x637   :  { %2396 = vmatpush3.msra.mxu0 %v3210_v32 }
 0x638   :  { %2397 = vmatprep.subr.mxu0 %v2722_v0 }
 0x639   :  { %2398 = vmatpush3.msra.mxu0 %v3214_v33 }
 0x63a   :  { %2399 = vmatprep.subr.mxu0 %v2722_v0 }
 0x63b   :  { %2400 = vmatpush3.msra.mxu0 %v3218_v34 }
 0x63c   :  { %2439 = vmatprep.subr.mxu0 %v2722_v0 }
 0x6bc   :  { %v799_v42 = vpop.f32.mrf.mxu0 }
 0x6bd   :  { %v803_v43 = vadd.f32 %v799_v42, %v210_v39  ;;  %v1528_v39 = vld [vmem:[#allocation6 + $0x8] sm:$0xff]  ;;  %v1527_v42 = vld [vmem:[#allocation6] sm:$0xff] }
 0x6be   :  { %v2254_v44 = vpop.f32.mrf.mxu0 }
 0x6bf   :  { %2635 = vtanh.f32 %v803_v43 }
 0x6cc   :  { %v2636_v45 = vpop.eup %2635 }
 0x6cd   :  { %2297 = vmatmul.mubr.f32.gmra.mxu1 %v2636_v45 }
 0x6ce   :  { %2366 = vmatprep.mubr.msk.f32.mxu1 %vm2723_vm0, %v2722_v0 }
 0x6dc   :  { %v1017_v50 = vpop.f32.mrf.mxu0 }
 0x6dd   :  { %v1021_v27 = vadd.f32 %v1017_v50, %v896_v49  ;;  %v1638_v49 = vld [vmem:[%s3524_s6] ss:$0 sm:$0xff] }
 0x6de   :  { %v2333_v38 = vpop.f32.mrf.mxu0 }
 0x6df   :  { %2637 = vtanh.f32 %v1021_v27 }
 0x6ec   :  { %v2638_v51 = vpop.eup %2637 }
 0x6ed   :  { %2367 = vmatmul.mubr.f32.vlgmr.msra.gmra.mxu1 %v2638_v51 }
 0x6ee   :  { %2405 = vmatpush3.msra.mxu1 %v3159_v18  ;;  %2436 = vmatprep.mubr.msk.f32.mxu1 %vm2723_vm0, %v2722_v0 }
 0x6ef   :  { %2406 = vmatprep.subr.mxu1 %v2722_v0 }
 0x6f0   :  { %2407 = vmatpush3.msra.mxu1 %v3162_v19 }
 0x6f1   :  { %2408 = vmatprep.subr.mxu1 %v2722_v0 }
 0x6f2   :  { %2409 = vmatpush3.msra.mxu1 %v3166_v20 }
 0x6f3   :  { %2410 = vmatprep.subr.mxu1 %v2722_v0 }
 0x6f4   :  { %2411 = vmatpush3.msra.mxu1 %v3170_v21 }
 0x6f5   :  { %2412 = vmatprep.subr.mxu1 %v2722_v0 }
 0x6f6   :  { %2413 = vmatpush3.msra.mxu1 %v3174_v22 }
 0x6f7   :  { %2414 = vmatprep.subr.mxu1 %v2722_v0 }
 0x6f8   :  { %2415 = vmatpush3.msra.mxu1 %v3178_v23 }
 0x6f9   :  { %2416 = vmatprep.subr.mxu1 %v2722_v0 }
 0x6fa   :  { %2417 = vmatpush3.msra.mxu1 %v3182_v24 }
 0x6fb   :  { %2418 = vmatprep.subr.mxu1 %v2722_v0 }
 0x6fc   :  { %2419 = vmatpush3.msra.mxu1 %v3186_v25 }
 0x6fd   :  { %2420 = vmatprep.subr.mxu1 %v2722_v0 }
 0x6fe   :  { %2421 = vmatpush3.msra.mxu1 %v3190_v26 }
 0x6ff   :  { %2422 = vmatprep.subr.mxu1 %v2722_v0 }
 0x700   :  { %2423 = vmatpush3.msra.mxu1 %v3194_v28 }
 0x701   :  { %2424 = vmatprep.subr.mxu1 %v2722_v0 }
 0x702   :  { %2425 = vmatpush3.msra.mxu1 %v3198_v29 }
 0x703   :  { %2426 = vmatprep.subr.mxu1 %v2722_v0 }
 0x704   :  { %2427 = vmatpush3.msra.mxu1 %v3202_v30 }
 0x705   :  { %2428 = vmatprep.subr.mxu1 %v2722_v0 }
 0x706   :  { %2429 = vmatpush3.msra.mxu1 %v3206_v31 }
 0x707   :  { %2430 = vmatprep.subr.mxu1 %v2722_v0 }
 0x708   :  { %2431 = vmatpush3.msra.mxu1 %v3210_v32 }
 0x709   :  { %2432 = vmatprep.subr.mxu1 %v2722_v0 }
 0x70a   :  { %2433 = vmatpush3.msra.mxu1 %v3214_v33 }
 0x70b   :  { %2434 = vmatprep.subr.mxu1 %v2722_v0 }
 0x70c   :  { %2435 = vmatpush3.msra.mxu1 %v3218_v34 }
 0x70d   :  { %2474 = vmatprep.subr.mxu1 %v2722_v0 }
 0x78d   :  { %v3344_v56 = vpop.f32.mrf.mxu1 }
 0x78e   :  { %v931_v43 = vadd.f32 %v3344_v56, %v3301_v48 }
 0x78f   :  { %v3346_v57 = vpop.f32.mrf.mxu1 }
 0x7ad   :  { %v1089_v59 = vpop.f32.mrf.mxu1 }
 0x7ae   :  { %v1093_v60 = vadd.f32 %v1089_v59, %v901_v58 }
 0x7af   :  { %v2368_v61 = vpop.f32.mrf.mxu1 }
 0x7b0   :  { %2639 = vtanh.f32 %v1093_v60 }
 0x7bd   :  { %v2640_v62 = vpop.eup %2639 }
 0x7be   :  { %2402 = vmatmul.mubr.f32.vlgmr.msra.gmra.mxu0 %v2640_v62 }
 0x7bf   :  { %2440 = vmatpush3.msra.mxu0 %v3159_v18  ;;  %2471 = vmatprep.mubr.msk.f32.mxu0 %vm2723_vm0, %v2722_v0 }
 0x7c0   :  { %2441 = vmatprep.subr.mxu0 %v2722_v0 }
 0x7c1   :  { %2442 = vmatpush3.msra.mxu0 %v3162_v19 }
 0x7c2   :  { %2443 = vmatprep.subr.mxu0 %v2722_v0 }
 0x7c3   :  { %2444 = vmatpush3.msra.mxu0 %v3166_v20 }
 0x7c4   :  { %2445 = vmatprep.subr.mxu0 %v2722_v0 }
 0x7c5   :  { %2446 = vmatpush3.msra.mxu0 %v3170_v21 }
 0x7c6   :  { %2447 = vmatprep.subr.mxu0 %v2722_v0 }
 0x7c7   :  { %2448 = vmatpush3.msra.mxu0 %v3174_v22 }
 0x7c8   :  { %2449 = vmatprep.subr.mxu0 %v2722_v0 }
 0x7c9   :  { %2450 = vmatpush3.msra.mxu0 %v3178_v23 }
 0x7ca   :  { %2451 = vmatprep.subr.mxu0 %v2722_v0 }
 0x7cb   :  { %2452 = vmatpush3.msra.mxu0 %v3182_v24 }
 0x7cc   :  { %2453 = vmatprep.subr.mxu0 %v2722_v0 }
 0x7cd   :  { %2454 = vmatpush3.msra.mxu0 %v3186_v25 }
 0x7ce   :  { %2455 = vmatprep.subr.mxu0 %v2722_v0 }
 0x7cf   :  { %2456 = vmatpush3.msra.mxu0 %v3190_v26 }
 0x7d0   :  { %2457 = vmatprep.subr.mxu0 %v2722_v0 }
 0x7d1   :  { %2458 = vmatpush3.msra.mxu0 %v3194_v28 }
 0x7d2   :  { %2459 = vmatprep.subr.mxu0 %v2722_v0 }
 0x7d3   :  { %2460 = vmatpush3.msra.mxu0 %v3198_v29 }
 0x7d4   :  { %2461 = vmatprep.subr.mxu0 %v2722_v0 }
 0x7d5   :  { %2462 = vmatpush3.msra.mxu0 %v3202_v30 }
 0x7d6   :  { %2463 = vmatprep.subr.mxu0 %v2722_v0 }
 0x7d7   :  { %2464 = vmatpush3.msra.mxu0 %v3206_v31 }
 0x7d8   :  { %2465 = vmatprep.subr.mxu0 %v2722_v0 }
 0x7d9   :  { %2466 = vmatpush3.msra.mxu0 %v3210_v32 }
 0x7da   :  { %2467 = vmatprep.subr.mxu0 %v2722_v0 }
 0x7db   :  { %2468 = vmatpush3.msra.mxu0 %v3214_v33 }
 0x7dc   :  { %2469 = vmatprep.subr.mxu0 %v2722_v0 }
 0x7dd   :  { %2470 = vmatpush3.msra.mxu0 %v3218_v34 }
 0x7de   :  { %2509 = vmatprep.subr.mxu0 %v2722_v0 }
 0x87e   :  { %v1161_v1 = vpop.f32.mrf.mxu0 }
 0x87f   :  { %v1165_v2 = vadd.f32 %v1161_v1, %v906_v63 }
 0x880   :  { %v2403_v3 = vpop.f32.mrf.mxu0 }
 0x881   :  { %2641 = vtanh.f32 %v1165_v2 }
 0x88e   :  { %v2642_v4 = vpop.eup %2641 }
 0x88f   :  { %2437 = vmatmul.mubr.f32.vlgmr.msra.gmra.mxu1 %v2642_v4 }
 0x890   :  { %2475 = vmatpush3.msra.mxu1 %v3159_v18  ;;  %2506 = vmatprep.mubr.msk.f32.mxu1 %vm2723_vm0, %v2722_v0 }
 0x891   :  { %2476 = vmatprep.subr.mxu1 %v2722_v0 }
 0x892   :  { %2477 = vmatpush3.msra.mxu1 %v3162_v19 }
 0x893   :  { %2478 = vmatprep.subr.mxu1 %v2722_v0 }
 0x894   :  { %2479 = vmatpush3.msra.mxu1 %v3166_v20 }
 0x895   :  { %2480 = vmatprep.subr.mxu1 %v2722_v0 }
 0x896   :  { %2481 = vmatpush3.msra.mxu1 %v3170_v21 }
 0x897   :  { %2482 = vmatprep.subr.mxu1 %v2722_v0 }
 0x898   :  { %2483 = vmatpush3.msra.mxu1 %v3174_v22 }
 0x899   :  { %2484 = vmatprep.subr.mxu1 %v2722_v0 }
 0x89a   :  { %2485 = vmatpush3.msra.mxu1 %v3178_v23 }
 0x89b   :  { %2486 = vmatprep.subr.mxu1 %v2722_v0 }
 0x89c   :  { %2487 = vmatpush3.msra.mxu1 %v3182_v24 }
 0x89d   :  { %2488 = vmatprep.subr.mxu1 %v2722_v0 }
 0x89e   :  { %2489 = vmatpush3.msra.mxu1 %v3186_v25 }
 0x89f   :  { %2490 = vmatprep.subr.mxu1 %v2722_v0 }
 0x8a0   :  { %2491 = vmatpush3.msra.mxu1 %v3190_v26 }
 0x8a1   :  { %2492 = vmatprep.subr.mxu1 %v2722_v0 }
 0x8a2   :  { %2493 = vmatpush3.msra.mxu1 %v3194_v28 }
 0x8a3   :  { %2494 = vmatprep.subr.mxu1 %v2722_v0 }
 0x8a4   :  { %2495 = vmatpush3.msra.mxu1 %v3198_v29 }
 0x8a5   :  { %2496 = vmatprep.subr.mxu1 %v2722_v0 }
 0x8a6   :  { %2497 = vmatpush3.msra.mxu1 %v3202_v30 }
 0x8a7   :  { %2498 = vmatprep.subr.mxu1 %v2722_v0 }
 0x8a8   :  { %2499 = vmatpush3.msra.mxu1 %v3206_v31 }
 0x8a9   :  { %2500 = vmatprep.subr.mxu1 %v2722_v0 }
 0x8aa   :  { %2501 = vmatpush3.msra.mxu1 %v3210_v32 }
 0x8ab   :  { %2502 = vmatprep.subr.mxu1 %v2722_v0 }
 0x8ac   :  { %2503 = vmatpush3.msra.mxu1 %v3214_v33 }
 0x8ad   :  { %2504 = vmatprep.subr.mxu1 %v2722_v0 }
 0x8ae   :  { %2505 = vmatpush3.msra.mxu1 %v3218_v34 }
 0x8af   :  { %2544 = vmatprep.subr.mxu1 %v2722_v0 }
 0x94f   :  { %v1233_v6 = vpop.f32.mrf.mxu1 }
 0x950   :  { %v1237_v7 = vadd.f32 %v1233_v6, %v911_v5 }
 0x951   :  { %v2438_v8 = vpop.f32.mrf.mxu1 }
 0x952   :  { %2643 = vtanh.f32 %v1237_v7 }
 0x95f   :  { %v2644_v9 = vpop.eup %2643 }
 0x960   :  { %2472 = vmatmul.mubr.f32.vlgmr.msra.gmra.mxu0 %v2644_v9 }
 0x961   :  { %2510 = vmatpush3.msra.mxu0 %v3159_v18  ;;  %2541 = vmatprep.mubr.msk.f32.mxu0 %vm2723_vm0, %v2722_v0 }
 0x962   :  { %2511 = vmatprep.subr.mxu0 %v2722_v0 }
 0x963   :  { %2512 = vmatpush3.msra.mxu0 %v3162_v19 }
 0x964   :  { %2513 = vmatprep.subr.mxu0 %v2722_v0 }
 0x965   :  { %2514 = vmatpush3.msra.mxu0 %v3166_v20 }
 0x966   :  { %2515 = vmatprep.subr.mxu0 %v2722_v0 }
 0x967   :  { %2516 = vmatpush3.msra.mxu0 %v3170_v21 }
 0x968   :  { %2517 = vmatprep.subr.mxu0 %v2722_v0 }
 0x969   :  { %2518 = vmatpush3.msra.mxu0 %v3174_v22 }
 0x96a   :  { %2519 = vmatprep.subr.mxu0 %v2722_v0 }
 0x96b   :  { %2520 = vmatpush3.msra.mxu0 %v3178_v23 }
 0x96c   :  { %2521 = vmatprep.subr.mxu0 %v2722_v0 }
 0x96d   :  { %2522 = vmatpush3.msra.mxu0 %v3182_v24 }
 0x96e   :  { %2523 = vmatprep.subr.mxu0 %v2722_v0 }
 0x96f   :  { %2524 = vmatpush3.msra.mxu0 %v3186_v25 }
 0x970   :  { %2525 = vmatprep.subr.mxu0 %v2722_v0 }
 0x971   :  { %2526 = vmatpush3.msra.mxu0 %v3190_v26 }
 0x972   :  { %2527 = vmatprep.subr.mxu0 %v2722_v0 }
 0x973   :  { %2528 = vmatpush3.msra.mxu0 %v3194_v28 }
 0x974   :  { %2529 = vmatprep.subr.mxu0 %v2722_v0 }
 0x975   :  { %2530 = vmatpush3.msra.mxu0 %v3198_v29 }
 0x976   :  { %2531 = vmatprep.subr.mxu0 %v2722_v0 }
 0x977   :  { %2532 = vmatpush3.msra.mxu0 %v3202_v30 }
 0x978   :  { %2533 = vmatprep.subr.mxu0 %v2722_v0 }
 0x979   :  { %2534 = vmatpush3.msra.mxu0 %v3206_v31 }
 0x97a   :  { %2535 = vmatprep.subr.mxu0 %v2722_v0 }
 0x97b   :  { %2536 = vmatpush3.msra.mxu0 %v3210_v32 }
 0x97c   :  { %2537 = vmatprep.subr.mxu0 %v2722_v0 }
 0x97d   :  { %2538 = vmatpush3.msra.mxu0 %v3214_v33 }
 0x97e   :  { %2539 = vmatprep.subr.mxu0 %v2722_v0 }
 0x97f   :  { %2540 = vmatpush3.msra.mxu0 %v3218_v34 }
 0x980   :  { %2579 = vmatprep.subr.mxu0 %v2722_v0 }
 0xa20   :  { %v1305_v11 = vpop.f32.mrf.mxu0 }
 0xa21   :  { %v1309_v12 = vadd.f32 %v1305_v11, %v916_v10 }
 0xa22   :  { %v2473_v13 = vpop.f32.mrf.mxu0 }
 0xa23   :  { %2645 = vtanh.f32 %v1309_v12 }
 0xa30   :  { %v2646_v14 = vpop.eup %2645 }
 0xa31   :  { %2507 = vmatmul.mubr.f32.vlgmr.msra.gmra.mxu1 %v2646_v14 }
 0xa32   :  { %2545 = vmatpush3.msra.mxu1 %v3159_v18  ;;  %2576 = vmatprep.mubr.msk.f32.mxu1 %vm2723_vm0, %v2722_v0 }
 0xa33   :  { %2546 = vmatprep.subr.mxu1 %v2722_v0 }
 0xa34   :  { %2547 = vmatpush3.msra.mxu1 %v3162_v19 }
 0xa35   :  { %2548 = vmatprep.subr.mxu1 %v2722_v0 }
 0xa36   :  { %2549 = vmatpush3.msra.mxu1 %v3166_v20  ;;  %v1542_v20 = vld [vmem:[#allocation6 + $0x78] sm:$0xff] }
 0xa37   :  { %2550 = vmatprep.subr.mxu1 %v2722_v0 }
 0xa38   :  { %2551 = vmatpush3.msra.mxu1 %v3170_v21  ;;  %v1541_v21 = vld [vmem:[#allocation6 + $0x70] sm:$0xff] }
 0xa39   :  { %2552 = vmatprep.subr.mxu1 %v2722_v0 }
 0xa3a   :  { %2553 = vmatpush3.msra.mxu1 %v3174_v22  ;;  %v1540_v22 = vld [vmem:[#allocation6 + $0x68] sm:$0xff] }
 0xa3b   :  { %2554 = vmatprep.subr.mxu1 %v2722_v0 }
 0xa3c   :  { %2555 = vmatpush3.msra.mxu1 %v3178_v23  ;;  %v1539_v23 = vld [vmem:[#allocation6 + $0x60] sm:$0xff] }
 0xa3d   :  { %2556 = vmatprep.subr.mxu1 %v2722_v0 }
 0xa3e   :  { %2557 = vmatpush3.msra.mxu1 %v3182_v24  ;;  %v1538_v24 = vld [vmem:[#allocation6 + $0x58] sm:$0xff] }
 0xa3f   :  { %2558 = vmatprep.subr.mxu1 %v2722_v0 }
 0xa40   :  { %2559 = vmatpush3.msra.mxu1 %v3186_v25  ;;  %v1537_v25 = vld [vmem:[#allocation6 + $0x50] sm:$0xff] }
 0xa41   :  { %2560 = vmatprep.subr.mxu1 %v2722_v0 }
 0xa42   :  { %2561 = vmatpush3.msra.mxu1 %v3190_v26  ;;  %v1536_v26 = vld [vmem:[#allocation6 + $0x48] sm:$0xff] }
 0xa43   :  { %2562 = vmatprep.subr.mxu1 %v2722_v0 }
 0xa44   :  { %2563 = vmatpush3.msra.mxu1 %v3194_v28  ;;  %v926_v28 = vadd.f32 %v3301_v48, %v3346_v57 }
 0xa45   :  { %2564 = vmatprep.subr.mxu1 %v2722_v0 }
 0xa46   :  { %2565 = vmatpush3.msra.mxu1 %v3198_v29 }
 0xa47   :  { %2566 = vmatprep.subr.mxu1 %v2722_v0 }
 0xa48   :  { %2567 = vmatpush3.msra.mxu1 %v3202_v30 }
 0xa49   :  { %2568 = vmatprep.subr.mxu1 %v2722_v0 }
 0xa4a   :  { %2569 = vmatpush3.msra.mxu1 %v3206_v31 }
 0xa4b   :  { %2570 = vmatprep.subr.mxu1 %v2722_v0 }
 0xa4c   :  { %2571 = vmatpush3.msra.mxu1 %v3210_v32 }
 0xa4d   :  { %2572 = vmatprep.subr.mxu1 %v2722_v0 }
 0xa4e   :  { %2573 = vmatpush3.msra.mxu1 %v3214_v33  ;;  %v1535_v33 = vld [vmem:[#allocation6 + $0x40] sm:$0xff] }
 0xa4f   :  { %2574 = vmatprep.subr.mxu1 %v2722_v0 }
 0xa50   :  { %2575 = vmatpush3.msra.mxu1 %v3218_v34  ;;  %v1534_v34 = vld [vmem:[#allocation6 + $0x38] sm:$0xff] }
 0xaf1   :  { %v1377_v16 = vpop.f32.mrf.mxu1 }
 0xaf2   :  { %v1381_v17 = vadd.f32 %v1377_v16, %v921_v15 }
 0xaf3   :  { %v2508_v18 = vpop.f32.mrf.mxu1 }
 0xaf4   :  { %2647 = vtanh.f32 %v1381_v17 }
 0xb01   :  { %v2648_v19 = vpop.eup %2647 }
 0xb02   :  { %2542 = vmatmul.mubr.f32.vlgmr.msra.gmra.mxu0 %v2648_v19 }
 0xb03   :  { %2611 = vmatprep.mubr.msk.f32.mxu0 %vm2723_vm0, %v2722_v0  ;;  %2580 = vmatpush3.msra.mxu0 %v1542_v20 }
 0xb04   :  { %2581 = vmatprep.subr.mxu0 %v2722_v0 }
 0xb05   :  { %2582 = vmatpush3.msra.mxu0 %v1541_v21 }
 0xb06   :  { %2583 = vmatprep.subr.mxu0 %v2722_v0 }
 0xb07   :  { %2584 = vmatpush3.msra.mxu0 %v1540_v22 }
 0xb08   :  { %2585 = vmatprep.subr.mxu0 %v2722_v0 }
 0xb09   :  { %2586 = vmatpush3.msra.mxu0 %v1539_v23 }
 0xb0a   :  { %2587 = vmatprep.subr.mxu0 %v2722_v0 }
 0xb0b   :  { %2588 = vmatpush3.msra.mxu0 %v1538_v24 }
 0xb0c   :  { %2589 = vmatprep.subr.mxu0 %v2722_v0 }
 0xb0d   :  { %2590 = vmatpush3.msra.mxu0 %v1537_v25 }
 0xb0e   :  { %2591 = vmatprep.subr.mxu0 %v2722_v0 }
 0xb0f   :  { %2592 = vmatpush3.msra.mxu0 %v1536_v26 }
 0xb10   :  { %2593 = vmatprep.subr.mxu0 %v2722_v0 }
 0xb11   :  { %2594 = vmatpush3.msra.mxu0 %v1535_v33 }
 0xb12   :  { %2595 = vmatprep.subr.mxu0 %v2722_v0 }
 0xb13   :  { %2596 = vmatpush3.msra.mxu0 %v1534_v34 }
 0xb14   :  { %2597 = vmatprep.subr.mxu0 %v2722_v0 }
 0xb15   :  { %2598 = vmatpush3.msra.mxu0 %v1533_v35 }
 0xb16   :  { %2599 = vmatprep.subr.mxu0 %v2722_v0 }
 0xb17   :  { %2600 = vmatpush3.msra.mxu0 %v1532_v36 }
 0xb18   :  { %2601 = vmatprep.subr.mxu0 %v2722_v0 }
 0xb19   :  { %2602 = vmatpush3.msra.mxu0 %v1531_v37 }
 0xb1a   :  { %2603 = vmatprep.subr.mxu0 %v2722_v0 }
 0xb1b   :  { %2604 = vmatpush3.msra.mxu0 %v1530_v40 }
 0xb1c   :  { %2605 = vmatprep.subr.mxu0 %v2722_v0 }
 0xb1d   :  { %2606 = vmatpush3.msra.mxu0 %v1529_v41 }
 0xb1e   :  { %2607 = vmatprep.subr.mxu0 %v2722_v0 }
 0xb1f   :  { %2608 = vmatpush3.msra.mxu0 %v1528_v39 }
 0xb20   :  { %2609 = vmatprep.subr.mxu0 %v2722_v0 }
 0xb21   :  { %2610 = vmatpush3.msra.mxu0 %v1527_v42 }
 0xbc2   :  { %v1449_v29 = vpop.f32.mrf.mxu0 }
 0xbc3   :  { %v1453_v30 = vadd.f32 %v1449_v29, %v926_v28 }
 0xbc4   :  { %v2543_v31 = vpop.f32.mrf.mxu0 }
 0xbc5   :  { %2649 = vtanh.f32 %v1453_v30 }
 0xbd2   :  { %v2650_v32 = vpop.eup %2649 }
 0xbd3   :  { %2577 = vmatmul.mubr.f32.vlgmr.msra.gmra.mxu1 %v2650_v32 }
 0xc93   :  { %v1521_v44 = vpop.f32.mrf.mxu1 }
 0xc94   :  { %v1525_v45 = vadd.f32 %v1521_v44, %v931_v43 }
 0xc95   :  { %v2578_v46 = vpop.f32.mrf.mxu1 }
 0xc96   :  { %2651 = vtanh.f32 %v1525_v45 }
 0xca3   :  { %v2652_v47 = vpop.eup %2651 }
 0xca4   :  { %2612 = vmatmul.mubr.f32.vlgmr.msra.gmra.mxu0 %v2652_v47 }
 0xd64   :  { %v1616_v50 = vpop.f32.mrf.mxu0 }
 0xd65   :  { %v1617_v27 = vadd.f32 %v1638_v49, %v1616_v50 }
 0xd66   :  { %v2613_v38 = vpop.f32.mrf.mxu0 }
 0xd67   :  { %1620 = vst [vmem:[%s3525_s7] sm:$0xff] %v1617_v27 }
 0xd68   :  { %1625 = vsyncpa [#allocation3], 1 }
 0xd69   :  { %1626 = vsyncpa [#allocation5], 1 }

</bundles_post_ra>
